<compile_context>
chip_gen: v7x
topology: tpu7x:2x2x1
jax: 0.10.0
libtpu: 0.0.40
codegen_flags: <defaults>
</compile_context>

<pallas_src>
import functools

import jax
import jax.numpy as jnp
from jax import lax
from jax.experimental import pallas as pl
from jax.experimental.pallas import tpu as pltpu

VMEM = pltpu.MemorySpace.VMEM
HIGHEST = jax.lax.Precision.HIGHEST


# ----------------------------------------------------------------------------
# Lane-tile sizing (perf-review items 2/3): full-R single block when small,
# otherwise >=2 big parallel blocks (v7x: both TensorCores), ~4 MB per block.
# ----------------------------------------------------------------------------
def _round_up(x, m):
    return ((x + m - 1) // m) * m


def _pick_lane_tile(r, col_bytes, max_block_bytes=4 << 20, split_above=2048):
    max_tile = min(8192, max(256, (max_block_bytes // col_bytes) // 128 * 128))
    if r <= split_above and r <= max_tile:
        tile = _round_up(r, 128)                 # one full-R lane-dense block
    else:
        nsteps = max(2, -(-r // max_tile))       # >=2 parallel steps for v7x's 2 TCs
        tile = _round_up(-(-r // nsteps), 128)
    return tile, _round_up(r, tile)


# ----------------------------------------------------------------------------
# Pallas kernel 1: fused conv-as-matmul + bias + relu + 2x2 maxpool.
#   p_ref holds the 4 pool-sub-position patch matrices [4, K, tile];
#   out[N, tile] = relu(max_j(W @ P_j) + b)  ==  relu(maxpool2x2(conv(x))).
# ----------------------------------------------------------------------------
def _conv_pool_kernel(w_ref, b_ref, p_ref, o_ref):
    w = w_ref[...]
    y = jnp.dot(w, p_ref[0], preferred_element_type=jnp.float32)
    for j in range(1, 4):                        # 2x2 maxpool = max over sub-positions
        y = jnp.maximum(y, jnp.dot(w, p_ref[j], preferred_element_type=jnp.float32))
    o_ref[...] = jnp.maximum(y + b_ref[...], 0.0)


def conv_pool_relu(w, b, patches4):
    """w: [N, K], b: [N, 1], patches4: [4, K, R] (R = nimg*Hp*Wp pooled positions).
    Returns relu(maxpool2x2(conv)) as [N, R] (channel-major, lane-dense)."""
    n_out, k_dim = w.shape
    r = patches4.shape[-1]
    tile, r_pad = _pick_lane_tile(r, col_bytes=4 * k_dim * 4)
    if r_pad != r:                               # pad lane axis to the tile
        patches4 = jnp.pad(patches4, ((0, 0), (0, 0), (0, r_pad - r)))
    out = pl.pallas_call(
        _conv_pool_kernel,
        out_shape=jax.ShapeDtypeStruct((n_out, r_pad), jnp.float32),
        grid=(r_pad // tile,),
        in_specs=[pl.BlockSpec((n_out, k_dim), lambda i: (0, 0)),
                  pl.BlockSpec((n_out, 1), lambda i: (0, 0)),
                  pl.BlockSpec((4, k_dim, tile), lambda i: (0, 0, i))],
        out_specs=pl.BlockSpec((n_out, tile), lambda i: (0, i)),
        compiler_params=pltpu.CompilerParams(
            dimension_semantics=("parallel",)),  # shard lane tiles across TCs (v7x)
    )(w, b, patches4)
    return out[:, :r] if r_pad != r else out


# ----------------------------------------------------------------------------
# Pallas kernel 2: fused post-encoder head (single launch).
# fc1 -> (qry, mk_qry1||mk_qry2) and (kv, mk_key||mk_val) -> batched dot-product
# attention (masked softmax over M) -> predictor -> log_softmax.
# ----------------------------------------------------------------------------
def _head_kernel(flat_ref, labs_ref,
                 fc1_w_ref, fc1_b_ref, qry_w_ref, qry_b_ref,
                 mkq_w_ref, mkq_b_ref,
                 kvl_w_ref, kvlab_w_ref, kv_b_ref,
                 mkkv_w_ref, mkkv_b_ref,
                 pw1_ref, pw2_ref, pb_ref,
                 out_ref, *, n_batch, n_qry):
    f32 = jnp.float32

    def dot(a, b, precision=None):
        return jnp.dot(a, b, preferred_element_type=f32, precision=precision)

    def dot_nt(a, b):        # a[m,k] . b[n,k]^T -> [m,n]  (rhs transposed, MXU-native)
        return lax.dot_general(a, b, (((1,), (1,)), ((), ())),
                               preferred_element_type=f32)

    relu = lambda v: jnp.maximum(v, 0.0)

    # fc1 over all (M+1)*B encoded images at once.
    lat = relu(dot(flat_ref[...], fc1_w_ref[...]) + fc1_b_ref[...])
    q_lat = lat[:n_batch]                     # [B, n_img_latent]   (query images)
    r_lat = lat[n_batch:]                     # [M*B, n_img_latent] (reference images)

    # Query branch: mk_qry1 / mk_qry2 merged into one matmul.
    xq = relu(dot(q_lat, qry_w_ref[...]) + qry_b_ref[...])
    qq = jax.nn.sigmoid(dot(xq, mkq_w_ref[...]) + mkq_b_ref[...])      # [B, 2*n_qry]

    # Reference branch: kv's input concat folded into two matmuls;
    # mk_key / mk_val merged into one matmul.
    kvx = relu(dot(r_lat, kvl_w_ref[...]) + dot(labs_ref[...], kvlab_w_ref[...])
               + kv_b_ref[...])
    kv = jax.nn.sigmoid(dot(kvx, mkkv_w_ref[...]) + mkkv_b_ref[...])   # [MB, 2*n_qry]
    keys = kv[:, :n_qry]                      # [M*B, n_qry]
    vals = kv[:, n_qry:]                      # [M*B, n_val]

    # In-kernel mask: flattened reference row i belongs to batch element b
    # iff i % B == b.  Built from iota + M static compares (no HBM mask input).
    mb = kv.shape[0]
    m_refs = mb // n_batch
    row = lax.broadcasted_iota(jnp.int32, (n_batch, mb), 0)   # batch index b
    col = lax.broadcasted_iota(jnp.int32, (n_batch, mb), 1)   # reference index i
    valid = col == row
    for m in range(1, m_refs):
        valid = jnp.logical_or(valid, col == row + m * n_batch)

    def attend(q_half):
        """q_half [B, n_qry] -> context [B, n_val]; softmax over the M refs of each b."""
        s = dot_nt(q_half, keys)                              # [B, M*B]
        s = jnp.where(valid, s, -1e30)                        # keep this batch's M rows
        s = s - jnp.max(s, axis=1, keepdims=True)             # stable softmax (lane axis)
        e = jnp.exp(s)
        wgt = e * pl.reciprocal(jnp.sum(e, axis=1, keepdims=True), approx=True)
        return dot(wgt, vals)                                 # [B, n_val]

    c1 = attend(qq[:, :n_qry])
    c2 = attend(qq[:, n_qry:])
    logits = (dot(c1, pw1_ref[...], precision=HIGHEST)
              + dot(c2, pw2_ref[...], precision=HIGHEST) + pb_ref[...])
    z = logits - jnp.max(logits, axis=1, keepdims=True)
    out_ref[...] = z - jnp.log(jnp.sum(jnp.exp(z), axis=1, keepdims=True))


# ----------------------------------------------------------------------------
# Encoder glue: patch gather in XLA (channel-major, identity-kernel HIGHEST so the
# gather does not truncate activations), grouped by 2x2-pool sub-position so the
# Pallas conv kernel can fuse the pool; matmuls + relu + pool in Pallas.
# ----------------------------------------------------------------------------
def _pool_group(pat):
    """[K, nimg, Ho, Wo] patches -> [4, K, nimg*(Ho//2)*(Wo//2)] grouped by pool pos."""
    k_dim, nimg, ho, wo = pat.shape
    hp, wp = ho // 2, wo // 2
    pat = pat.reshape(k_dim, nimg, hp, 2, wp, 2)
    pat = jnp.transpose(pat, (3, 5, 0, 1, 2, 4))              # [2, 2, K, nimg, hp, wp]
    return pat.reshape(4, k_dim, nimg * hp * wp)


def encode_images(imgs, p):
    """NCHW [(nimg), C, H, W] -> conv features [nimg, n_conv_hidden] (PyTorch flatten)."""
    nimg = imgs.shape[0]
    k = 5
    # conv1 + bias + relu + 2x2 maxpool (fused in one Pallas call)
    pat = lax.conv_general_dilated_patches(
        imgs, (k, k), (1, 1), 'VALID',
        dimension_numbers=('NCHW', 'OIHW', 'CNHW'), precision=HIGHEST)
    y = conv_pool_relu(p['conv1_wr'], p['conv1_br'], _pool_group(pat))
    c1 = p['conv1_wr'].shape[0]
    h1, w1 = (imgs.shape[2] - k + 1) // 2, (imgs.shape[3] - k + 1) // 2
    y = y.reshape(c1, nimg, h1, w1)                           # channel-major activation

    # conv2 + bias + relu + 2x2 maxpool
    pat = lax.conv_general_dilated_patches(
        y, (k, k), (1, 1), 'VALID',
        dimension_numbers=('CNHW', 'OIHW', 'CNHW'), precision=HIGHEST)
    y = conv_pool_relu(p['conv2_wr'], p['conv2_br'], _pool_group(pat))
    c2 = p['conv2_wr'].shape[0]
    h2, w2 = (h1 - k + 1) // 2, (w1 - k + 1) // 2
    y = y.reshape(c2, nimg, h2, w2)

    # flatten exactly like PyTorch NCHW x.view(-1, n_conv_hidden)
    return jnp.transpose(y, (1, 0, 2, 3)).reshape(nimg, -1)


def refnn_forward(img, ref_imgs, ref_labs, p):
    """img: [B,C,W,W], ref_imgs: [M,B,C,W,W], ref_labs: [M,B,n_labels]."""
    B = img.shape[0]
    M = ref_imgs.shape[0]
    n_labels = ref_labs.shape[-1]
    n_qry = p['mkq_w'].shape[1] // 2

    # one encoder pass for the query image and all M reference images
    imgs = jnp.concatenate([img[None], ref_imgs], axis=0)      # [M+1, B, C, H, W]
    imgs = imgs.reshape((-1,) + imgs.shape[2:])                # [(M+1)*B, C, H, W]
    flat = encode_images(imgs, p)                              # [(M+1)*B, n_conv_hidden]

    labs = ref_labs.reshape(M * B, n_labels)

    head = pl.pallas_call(
        functools.partial(_head_kernel, n_batch=B, n_qry=n_qry),
        out_shape=jax.ShapeDtypeStruct((B, n_labels), jnp.float32),
        in_specs=[pl.BlockSpec(memory_space=VMEM)] * 16,
        out_specs=pl.BlockSpec(memory_space=VMEM),
    )
    # TODO(synk): if B / M grow, add a batch grid (dimension_semantics=("parallel",))
    # and an explicit vmem_limit_bytes so the head shards across v7x's 2 TensorCores.
    return head(flat, labs,
                p['fc1_w'], p['fc1_b'], p['qry_w'], p['qry_b'],
                p['mkq_w'], p['mkq_b'],
                p['kvl_w'], p['kvlab_w'], p['kv_b'],
                p['mkkv_w'], p['mkkv_b'],
                p['pred_w1'], p['pred_w2'], p['pred_b'])


# ----------------------------------------------------------------------------
# Deterministic parameter initialization (shapes from RefNN.__init__)
# ----------------------------------------------------------------------------
def _init_linear(key, fan_in, fan_out):
    bound = 1.0 / (fan_in ** 0.5)
    kw, kb = jax.random.split(key)
    w = jax.random.uniform(kw, (fan_in, fan_out), jnp.float32, -bound, bound)
    b = jax.random.uniform(kb, (fan_out,), jnp.float32, -bound, bound)
    return w, b


def init_params(key, n_channel, w_img, n_labels):
    conv_hiddens = {(1, 28): 320, (3, 32): 500}
    n_conv_hidden = conv_hiddens[(n_channel, w_img)]
    n_img_latent, n_kv_latent, n_qry, n_val = 40, 40, 20, 20
    ks = jax.random.split(key, 10)
    p = {}
    p["conv1_w"], p["conv1_b"] = _init_linear(ks[0], n_channel * 25, 10)
    p["conv2_w"], p["conv2_b"] = _init_linear(ks[1], 10 * 25, 20)
    p["fc1_w"], p["fc1_b"] = _init_linear(ks[2], n_conv_hidden, n_img_latent)
    p["qry_w"], p["qry_b"] = _init_linear(ks[3], n_img_latent, n_img_latent)
    p["mk_qry1_w"], p["mk_qry1_b"] = _init_linear(ks[4], n_img_latent, n_qry)
    p["mk_qry2_w"], p["mk_qry2_b"] = _init_linear(ks[5], n_img_latent, n_qry)
    p["kv_w"], p["kv_b"] = _init_linear(ks[6], n_img_latent + n_labels, n_kv_latent)
    p["mk_key_w"], p["mk_key_b"] = _init_linear(ks[7], n_kv_latent, n_qry)
    p["mk_val_w"], p["mk_val_b"] = _init_linear(ks[8], n_kv_latent, n_val)
    pred_w, p["pred_b"] = _init_linear(ks[9], n_val + n_val, n_labels)
    p["pred_w1"], p["pred_w2"] = pred_w[:n_val], pred_w[n_val:]
    return p


def prepare_params(p):
    """Fuse / transpose parameters into the layout the Pallas kernels consume."""
    n_lat = p["fc1_w"].shape[1]
    q = {}
    q["conv1_wr"] = p["conv1_w"].T                 # [10, C*25]
    q["conv1_br"] = p["conv1_b"][:, None]          # [10, 1]
    q["conv2_wr"] = p["conv2_w"].T                 # [20, 250]
    q["conv2_br"] = p["conv2_b"][:, None]
    q["fc1_w"], q["fc1_b"] = p["fc1_w"], p["fc1_b"][None, :]
    q["qry_w"], q["qry_b"] = p["qry_w"], p["qry_b"][None, :]
    q["mkq_w"] = jnp.concatenate([p["mk_qry1_w"], p["mk_qry2_w"]], axis=1)   # [40, 40]
    q["mkq_b"] = jnp.concatenate([p["mk_qry1_b"], p["mk_qry2_b"]])[None, :]
    q["kvl_w"] = p["kv_w"][:n_lat]                 # latent part of the kv input
    q["kvlab_w"] = p["kv_w"][n_lat:]               # label part (folds the concat)
    q["kv_b"] = p["kv_b"][None, :]
    q["mkkv_w"] = jnp.concatenate([p["mk_key_w"], p["mk_val_w"]], axis=1)    # [40, 40]
    q["mkkv_b"] = jnp.concatenate([p["mk_key_b"], p["mk_val_b"]])[None, :]
    q["pred_w1"], q["pred_w2"] = p["pred_w1"], p["pred_w2"]
    q["pred_b"] = p["pred_b"][None, :]
    return q


# ----------------------------------------------------------------------------
# Pure-JAX reference of the PyTorch module (validation only, f32 HIGHEST)
# ----------------------------------------------------------------------------
def refnn_reference(img, ref_imgs, ref_labs, p):
    def conv2d(x, w_flat, b):
        cin, cout = x.shape[1], w_flat.shape[1]
        w = w_flat.T.reshape(cout, cin, 5, 5)
        y = lax.conv_general_dilated(
            x, w, (1, 1), 'VALID',
            dimension_numbers=('NCHW', 'OIHW', 'NCHW'), precision=HIGHEST)
        return y + b[None, :, None, None]

    def pool(x):
        n, c, h, w = x.shape
        return jnp.max(x.reshape(n, c, h // 2, 2, w // 2, 2), axis=(3, 5))

    relu = lambda v: jnp.maximum(v, 0.0)
    dot = functools.partial(jnp.dot, precision=HIGHEST)

    def enc(x):
        x = relu(pool(conv2d(x, p["conv1_w"], p["conv1_b"])))
        x = relu(pool(conv2d(x, p["conv2_w"], p["conv2_b"])))
        x = x.reshape(x.shape[0], -1)
        return relu(dot(x, p["fc1_w"]) + p["fc1_b"])

    B, M = img.shape[0], ref_imgs.shape[0]
    img_lat = enc(img)
    xq = relu(dot(img_lat, p["qry_w"]) + p["qry_b"])
    qry1 = jax.nn.sigmoid(dot(xq, p["mk_qry1_w"]) + p["mk_qry1_b"])
    qry2 = jax.nn.sigmoid(dot(xq, p["mk_qry2_w"]) + p["mk_qry2_b"])

    ref_lat = enc(ref_imgs.reshape((M * B,) + ref_imgs.shape[2:]))
    kv_in = jnp.concatenate([ref_lat, ref_labs.reshape(M * B, -1)], axis=1)
    kvx = relu(dot(kv_in, p["kv_w"]) + p["kv_b"])
    keys = jax.nn.sigmoid(dot(kvx, p["mk_key_w"]) + p["mk_key_b"]).reshape(M, B, -1)
    vals = jax.nn.sigmoid(dot(kvx, p["mk_val_w"]) + p["mk_val_b"]).reshape(M, B, -1)

    def ctx(q):
        s = jnp.sum(q[None, :, :] * keys, axis=2)       # [M, B]
        w = jax.nn.softmax(s, axis=0)
        return jnp.sum(w[:, :, None] * vals, axis=0)    # [B, n_val]

    logits = dot(ctx(qry1), p["pred_w1"]) + dot(ctx(qry2), p["pred_w2"]) + p["pred_b"]
    return jax.nn.log_softmax(logits, axis=1)


if __name__ == "__main__":
    B, M, C, W_IMG, N_LABELS = 2, 3, 1, 28, 10

    key = jax.random.PRNGKey(0)
    kp, ki, kr, kl = jax.random.split(key, 4)

    params = init_params(kp, C, W_IMG, N_LABELS)
    fused = prepare_params(params)

    img = jax.random.normal(ki, (B, C, W_IMG, W_IMG), jnp.float32)
    ref_imgs = jax.random.normal(kr, (M, B, C, W_IMG, W_IMG), jnp.float32)
    ref_labs = jax.nn.one_hot(
        jax.random.randint(kl, (M, B), 0, N_LABELS), N_LABELS
    ).astype(jnp.float32)

    fwd = jax.jit(lambda a, b, c: refnn_forward(a, b, c, fused))
    out = jax.block_until_ready(fwd(img, ref_imgs, ref_labs))

    assert out.shape == (B, N_LABELS)
    # log_softmax rows should exponentiate to ~1
    assert bool(jnp.allclose(jnp.sum(jnp.exp(out), axis=1), 1.0, atol=1e-3))

    # check the fused Pallas path against a pure-JAX reference of the module
    ref_out = jax.jit(lambda a, b, c: refnn_reference(a, b, c, params))(
        img, ref_imgs, ref_labs)
    assert bool(jnp.allclose(out, ref_out, atol=5e-2, rtol=5e-2)), (
        float(jnp.max(jnp.abs(out - ref_out))))

    print("KERNEL_OK")
</pallas_src>

<mosaic_0001>
module attributes {stable_mosaic.version = 11 : i64} {
  func.func @_conv_pool_kernel(%arg0: i32, %arg1: memref<10x25xf32, #tpu.memory_space<vmem>>, %arg2: memref<10x1xf32, #tpu.memory_space<vmem>>, %arg3: memref<4x25x1152xf32, #tpu.memory_space<vmem>>, %arg4: memref<10x1152xf32, #tpu.memory_space<vmem>>) attributes {dimension_semantics = [#tpu.dimension_semantics<parallel>], iteration_bounds = array<i64: 1>, scalar_prefetch = 0 : i64, scratch_operands = 0 : i64, tpu.core_type = #tpu.core_type<tc>, window_params = [{pipeline_mode = #tpu.pipeline_mode<synchronous>, transform_indices = @transform_0, window_bounds = array<i64: 10, 25>}, {pipeline_mode = #tpu.pipeline_mode<synchronous>, transform_indices = @transform_1, window_bounds = array<i64: 10, 1>}, {transform_indices = @transform_2, window_bounds = array<i64: 4, 25, 1152>}, {transform_indices = @transform_3, window_bounds = array<i64: 10, 1152>}]} {
    %c0 = arith.constant 0 : index
    %c0_0 = arith.constant 0 : index
    %0 = vector.load %arg1[%c0, %c0_0] : memref<10x25xf32, #tpu.memory_space<vmem>>, vector<10x25xf32>
    %c0_1 = arith.constant 0 : index
    %c0_2 = arith.constant 0 : index
    %c0_3 = arith.constant 0 : index
    %1 = vector.load %arg3[%c0_1, %c0_2, %c0_3] : memref<4x25x1152xf32, #tpu.memory_space<vmem>>, vector<1x25x1152xf32>
    %2 = vector.shape_cast %1 : vector<1x25x1152xf32> to vector<25x1152xf32>
    %cst = arith.constant dense<0.000000e+00> : vector<10x1152xf32>
    %3 = tpu.matmul %0, %2, %cst {dimension_numbers = #tpu.dot_dimension_numbers<[1], [0], [0], [1], [0, 0, 1, 1], [], []>} : vector<10x25xf32>, vector<25x1152xf32>, vector<10x1152xf32> -> vector<10x1152xf32>
    %c1 = arith.constant 1 : index
    %c0_4 = arith.constant 0 : index
    %c0_5 = arith.constant 0 : index
    %4 = vector.load %arg3[%c1, %c0_4, %c0_5] : memref<4x25x1152xf32, #tpu.memory_space<vmem>>, vector<1x25x1152xf32>
    %5 = vector.shape_cast %4 : vector<1x25x1152xf32> to vector<25x1152xf32>
    %cst_6 = arith.constant dense<0.000000e+00> : vector<10x1152xf32>
    %6 = tpu.matmul %0, %5, %cst_6 {dimension_numbers = #tpu.dot_dimension_numbers<[1], [0], [0], [1], [0, 0, 1, 1], [], []>} : vector<10x25xf32>, vector<25x1152xf32>, vector<10x1152xf32> -> vector<10x1152xf32>
    %7 = arith.maximumf %3, %6 : vector<10x1152xf32>
    %c2 = arith.constant 2 : index
    %c0_7 = arith.constant 0 : index
    %c0_8 = arith.constant 0 : index
    %8 = vector.load %arg3[%c2, %c0_7, %c0_8] : memref<4x25x1152xf32, #tpu.memory_space<vmem>>, vector<1x25x1152xf32>
    %9 = vector.shape_cast %8 : vector<1x25x1152xf32> to vector<25x1152xf32>
    %cst_9 = arith.constant dense<0.000000e+00> : vector<10x1152xf32>
    %10 = tpu.matmul %0, %9, %cst_9 {dimension_numbers = #tpu.dot_dimension_numbers<[1], [0], [0], [1], [0, 0, 1, 1], [], []>} : vector<10x25xf32>, vector<25x1152xf32>, vector<10x1152xf32> -> vector<10x1152xf32>
    %11 = arith.maximumf %7, %10 : vector<10x1152xf32>
    %c3 = arith.constant 3 : index
    %c0_10 = arith.constant 0 : index
    %c0_11 = arith.constant 0 : index
    %12 = vector.load %arg3[%c3, %c0_10, %c0_11] : memref<4x25x1152xf32, #tpu.memory_space<vmem>>, vector<1x25x1152xf32>
    %13 = vector.shape_cast %12 : vector<1x25x1152xf32> to vector<25x1152xf32>
    %cst_12 = arith.constant dense<0.000000e+00> : vector<10x1152xf32>
    %14 = tpu.matmul %0, %13, %cst_12 {dimension_numbers = #tpu.dot_dimension_numbers<[1], [0], [0], [1], [0, 0, 1, 1], [], []>} : vector<10x25xf32>, vector<25x1152xf32>, vector<10x1152xf32> -> vector<10x1152xf32>
    %15 = arith.maximumf %11, %14 : vector<10x1152xf32>
    %c0_13 = arith.constant 0 : index
    %c0_14 = arith.constant 0 : index
    %16 = vector.load %arg2[%c0_13, %c0_14] : memref<10x1xf32, #tpu.memory_space<vmem>>, vector<10x1xf32>
    %17 = vector.broadcast %16 : vector<10x1xf32> to vector<10x1152xf32>
    %18 = arith.addf %15, %17 : vector<10x1152xf32>
    %cst_15 = arith.constant 0.000000e+00 : f32
    %19 = vector.broadcast %cst_15 : f32 to vector<10x1152xf32>
    %20 = arith.maximumf %18, %19 : vector<10x1152xf32>
    %c0_16 = arith.constant 0 : index
    %c0_17 = arith.constant 0 : index
    %21 = vector.load %arg4[%c0_16, %c0_17] : memref<10x1152xf32, #tpu.memory_space<vmem>>, vector<10x1152xf32>
    tpu.vector_store %arg4[%c0_16, %c0_17], %20 {strides = array<i32>} : memref<10x1152xf32, #tpu.memory_space<vmem>>, vector<10x1152xf32>,
    return
  }
  func.func @transform_0(%arg0: i32) -> (i32, i32) {
    %c0_i32 = arith.constant 0 : i32
    %c0_i32_0 = arith.constant 0 : i32
    %c0_i32_1 = arith.constant 0 : i32
    return %c0_i32, %c0_i32_0 : i32, i32
  }
  func.func @transform_1(%arg0: i32) -> (i32, i32) {
    %c0_i32 = arith.constant 0 : i32
    %c0_i32_0 = arith.constant 0 : i32
    %c0_i32_1 = arith.constant 0 : i32
    return %c0_i32, %c0_i32_0 : i32, i32
  }
  func.func @transform_2(%arg0: i32) -> (i32, i32, i32) {
    %c0_i32 = arith.constant 0 : i32
    %c0_i32_0 = arith.constant 0 : i32
    %c0_i32_1 = arith.constant 0 : i32
    return %c0_i32, %c0_i32_0, %arg0 : i32, i32, i32
  }
  func.func @transform_3(%arg0: i32) -> (i32, i32) {
    %c0_i32 = arith.constant 0 : i32
    %c0_i32_0 = arith.constant 0 : i32
    return %c0_i32, %arg0 : i32, i32
  }
}

module attributes {stable_mosaic.version = 11 : i64} {
  func.func @_conv_pool_kernel(%arg0: i32, %arg1: memref<20x250xf32, #tpu.memory_space<vmem>>, %arg2: memref<20x1xf32, #tpu.memory_space<vmem>>, %arg3: memref<4x250x128xf32, #tpu.memory_space<vmem>>, %arg4: memref<20x128xf32, #tpu.memory_space<vmem>>) attributes {dimension_semantics = [#tpu.dimension_semantics<parallel>], iteration_bounds = array<i64: 1>, scalar_prefetch = 0 : i64, scratch_operands = 0 : i64, tpu.core_type = #tpu.core_type<tc>, window_params = [{pipeline_mode = #tpu.pipeline_mode<synchronous>, transform_indices = @transform_0, window_bounds = array<i64: 20, 250>}, {pipeline_mode = #tpu.pipeline_mode<synchronous>, transform_indices = @transform_1, window_bounds = array<i64: 20, 1>}, {transform_indices = @transform_2, window_bounds = array<i64: 4, 250, 128>}, {transform_indices = @transform_3, window_bounds = array<i64: 20, 128>}]} {
    %c0 = arith.constant 0 : index
    %c0_0 = arith.constant 0 : index
    %0 = vector.load %arg1[%c0, %c0_0] : memref<20x250xf32, #tpu.memory_space<vmem>>, vector<20x250xf32>
    %c0_1 = arith.constant 0 : index
    %c0_2 = arith.constant 0 : index
    %c0_3 = arith.constant 0 : index
    %1 = vector.load %arg3[%c0_1, %c0_2, %c0_3] : memref<4x250x128xf32, #tpu.memory_space<vmem>>, vector<1x250x128xf32>
    %2 = vector.shape_cast %1 : vector<1x250x128xf32> to vector<250x128xf32>
    %cst = arith.constant dense<0.000000e+00> : vector<20x128xf32>
    %3 = tpu.matmul %0, %2, %cst {dimension_numbers = #tpu.dot_dimension_numbers<[1], [0], [0], [1], [0, 0, 1, 1], [], []>} : vector<20x250xf32>, vector<250x128xf32>, vector<20x128xf32> -> vector<20x128xf32>
    %c1 = arith.constant 1 : index
    %c0_4 = arith.constant 0 : index
    %c0_5 = arith.constant 0 : index
    %4 = vector.load %arg3[%c1, %c0_4, %c0_5] : memref<4x250x128xf32, #tpu.memory_space<vmem>>, vector<1x250x128xf32>
    %5 = vector.shape_cast %4 : vector<1x250x128xf32> to vector<250x128xf32>
    %cst_6 = arith.constant dense<0.000000e+00> : vector<20x128xf32>
    %6 = tpu.matmul %0, %5, %cst_6 {dimension_numbers = #tpu.dot_dimension_numbers<[1], [0], [0], [1], [0, 0, 1, 1], [], []>} : vector<20x250xf32>, vector<250x128xf32>, vector<20x128xf32> -> vector<20x128xf32>
    %7 = arith.maximumf %3, %6 : vector<20x128xf32>
    %c2 = arith.constant 2 : index
    %c0_7 = arith.constant 0 : index
    %c0_8 = arith.constant 0 : index
    %8 = vector.load %arg3[%c2, %c0_7, %c0_8] : memref<4x250x128xf32, #tpu.memory_space<vmem>>, vector<1x250x128xf32>
    %9 = vector.shape_cast %8 : vector<1x250x128xf32> to vector<250x128xf32>
    %cst_9 = arith.constant dense<0.000000e+00> : vector<20x128xf32>
    %10 = tpu.matmul %0, %9, %cst_9 {dimension_numbers = #tpu.dot_dimension_numbers<[1], [0], [0], [1], [0, 0, 1, 1], [], []>} : vector<20x250xf32>, vector<250x128xf32>, vector<20x128xf32> -> vector<20x128xf32>
    %11 = arith.maximumf %7, %10 : vector<20x128xf32>
    %c3 = arith.constant 3 : index
    %c0_10 = arith.constant 0 : index
    %c0_11 = arith.constant 0 : index
    %12 = vector.load %arg3[%c3, %c0_10, %c0_11] : memref<4x250x128xf32, #tpu.memory_space<vmem>>, vector<1x250x128xf32>
    %13 = vector.shape_cast %12 : vector<1x250x128xf32> to vector<250x128xf32>
    %cst_12 = arith.constant dense<0.000000e+00> : vector<20x128xf32>
    %14 = tpu.matmul %0, %13, %cst_12 {dimension_numbers = #tpu.dot_dimension_numbers<[1], [0], [0], [1], [0, 0, 1, 1], [], []>} : vector<20x250xf32>, vector<250x128xf32>, vector<20x128xf32> -> vector<20x128xf32>
    %15 = arith.maximumf %11, %14 : vector<20x128xf32>
    %c0_13 = arith.constant 0 : index
    %c0_14 = arith.constant 0 : index
    %16 = vector.load %arg2[%c0_13, %c0_14] : memref<20x1xf32, #tpu.memory_space<vmem>>, vector<20x1xf32>
    %17 = vector.broadcast %16 : vector<20x1xf32> to vector<20x128xf32>
    %18 = arith.addf %15, %17 : vector<20x128xf32>
    %cst_15 = arith.constant 0.000000e+00 : f32
    %19 = vector.broadcast %cst_15 : f32 to vector<20x128xf32>
    %20 = arith.maximumf %18, %19 : vector<20x128xf32>
    %c0_16 = arith.constant 0 : index
    %c0_17 = arith.constant 0 : index
    %21 = vector.load %arg4[%c0_16, %c0_17] : memref<20x128xf32, #tpu.memory_space<vmem>>, vector<20x128xf32>
    tpu.vector_store %arg4[%c0_16, %c0_17], %20 {strides = array<i32>} : memref<20x128xf32, #tpu.memory_space<vmem>>, vector<20x128xf32>,
    return
  }
  func.func @transform_0(%arg0: i32) -> (i32, i32) {
    %c0_i32 = arith.constant 0 : i32
    %c0_i32_0 = arith.constant 0 : i32
    %c0_i32_1 = arith.constant 0 : i32
    return %c0_i32, %c0_i32_0 : i32, i32
  }
  func.func @transform_1(%arg0: i32) -> (i32, i32) {
    %c0_i32 = arith.constant 0 : i32
    %c0_i32_0 = arith.constant 0 : i32
    %c0_i32_1 = arith.constant 0 : i32
    return %c0_i32, %c0_i32_0 : i32, i32
  }
  func.func @transform_2(%arg0: i32) -> (i32, i32, i32) {
    %c0_i32 = arith.constant 0 : i32
    %c0_i32_0 = arith.constant 0 : i32
    %c0_i32_1 = arith.constant 0 : i32
    return %c0_i32, %c0_i32_0, %arg0 : i32, i32, i32
  }
  func.func @transform_3(%arg0: i32) -> (i32, i32) {
    %c0_i32 = arith.constant 0 : i32
    %c0_i32_0 = arith.constant 0 : i32
    return %c0_i32, %arg0 : i32, i32
  }
}

module attributes {stable_mosaic.version = 11 : i64} {
  func.func @_head_kernel(%arg0: memref<8x320xf32, #tpu.memory_space<vmem>>, %arg1: memref<6x10xf32, #tpu.memory_space<vmem>>, %arg2: memref<320x40xf32, #tpu.memory_space<vmem>>, %arg3: memref<1x40xf32, #tpu.memory_space<vmem>>, %arg4: memref<40x40xf32, #tpu.memory_space<vmem>>, %arg5: memref<1x40xf32, #tpu.memory_space<vmem>>, %arg6: memref<40x40xf32, #tpu.memory_space<vmem>>, %arg7: memref<1x40xf32, #tpu.memory_space<vmem>>, %arg8: memref<40x40xf32, #tpu.memory_space<vmem>>, %arg9: memref<10x40xf32, #tpu.memory_space<vmem>>, %arg10: memref<1x40xf32, #tpu.memory_space<vmem>>, %arg11: memref<40x40xf32, #tpu.memory_space<vmem>>, %arg12: memref<1x40xf32, #tpu.memory_space<vmem>>, %arg13: memref<20x10xf32, #tpu.memory_space<vmem>>, %arg14: memref<20x10xf32, #tpu.memory_space<vmem>>, %arg15: memref<1x10xf32, #tpu.memory_space<vmem>>, %arg16: memref<2x10xf32, #tpu.memory_space<vmem>>) attributes {dimension_semantics = [], scalar_prefetch = 0 : i64, scratch_operands = 0 : i64, tpu.core_type = #tpu.core_type<tc>} {
    %c0 = arith.constant 0 : index
    %c0_0 = arith.constant 0 : index
    %0 = vector.load %arg0[%c0, %c0_0] : memref<8x320xf32, #tpu.memory_space<vmem>>, vector<8x320xf32>
    %c0_1 = arith.constant 0 : index
    %c0_2 = arith.constant 0 : index
    %1 = vector.load %arg2[%c0_1, %c0_2] : memref<320x40xf32, #tpu.memory_space<vmem>>, vector<320x40xf32>
    %cst = arith.constant dense<0.000000e+00> : vector<8x40xf32>
    %2 = tpu.matmul %0, %1, %cst {dimension_numbers = #tpu.dot_dimension_numbers<[1], [0], [0], [1], [0, 0, 1, 1], [], []>} : vector<8x320xf32>, vector<320x40xf32>, vector<8x40xf32> -> vector<8x40xf32>
    %c0_3 = arith.constant 0 : index
    %c0_4 = arith.constant 0 : index
    %3 = vector.load %arg3[%c0_3, %c0_4] : memref<1x40xf32, #tpu.memory_space<vmem>>, vector<1x40xf32>
    %4 = vector.broadcast %3 : vector<1x40xf32> to vector<8x40xf32>
    %5 = arith.addf %2, %4 : vector<8x40xf32>
    %cst_5 = arith.constant 0.000000e+00 : f32
    %6 = vector.broadcast %cst_5 : f32 to vector<8x40xf32>
    %7 = arith.maximumf %5, %6 : vector<8x40xf32>
    %8 = vector.extract_strided_slice %7 {offsets = [0, 0], sizes = [2, 40], strides = [1, 1]} : vector<8x40xf32> to vector<2x40xf32>
    %9 = vector.extract_strided_slice %7 {offsets = [2, 0], sizes = [6, 40], strides = [1, 1]} : vector<8x40xf32> to vector<6x40xf32>
    %c0_6 = arith.constant 0 : index
    %c0_7 = arith.constant 0 : index
    %10 = vector.load %arg4[%c0_6, %c0_7] : memref<40x40xf32, #tpu.memory_space<vmem>>, vector<40x40xf32>
    %cst_8 = arith.constant dense<0.000000e+00> : vector<2x40xf32>
    %11 = tpu.matmul %8, %10, %cst_8 {dimension_numbers = #tpu.dot_dimension_numbers<[1], [0], [0], [1], [0, 0, 1, 1], [], []>} : vector<2x40xf32>, vector<40x40xf32>, vector<2x40xf32> -> vector<2x40xf32>
    %c0_9 = arith.constant 0 : index
    %c0_10 = arith.constant 0 : index
    %12 = vector.load %arg5[%c0_9, %c0_10] : memref<1x40xf32, #tpu.memory_space<vmem>>, vector<1x40xf32>
    %13 = vector.broadcast %12 : vector<1x40xf32> to vector<2x40xf32>
    %14 = arith.addf %11, %13 : vector<2x40xf32>
    %cst_11 = arith.constant 0.000000e+00 : f32
    %15 = vector.broadcast %cst_11 : f32 to vector<2x40xf32>
    %16 = arith.maximumf %14, %15 : vector<2x40xf32>
    %c0_12 = arith.constant 0 : index
    %c0_13 = arith.constant 0 : index
    %17 = vector.load %arg6[%c0_12, %c0_13] : memref<40x40xf32, #tpu.memory_space<vmem>>, vector<40x40xf32>
    %cst_14 = arith.constant dense<0.000000e+00> : vector<2x40xf32>
    %18 = tpu.matmul %16, %17, %cst_14 {dimension_numbers = #tpu.dot_dimension_numbers<[1], [0], [0], [1], [0, 0, 1, 1], [], []>} : vector<2x40xf32>, vector<40x40xf32>, vector<2x40xf32> -> vector<2x40xf32>
    %c0_15 = arith.constant 0 : index
    %c0_16 = arith.constant 0 : index
    %19 = vector.load %arg7[%c0_15, %c0_16] : memref<1x40xf32, #tpu.memory_space<vmem>>, vector<1x40xf32>
    %20 = vector.broadcast %19 : vector<1x40xf32> to vector<2x40xf32>
    %21 = arith.addf %18, %20 : vector<2x40xf32>
    %22 = arith.negf %21 : vector<2x40xf32>
    %23 = math.exp %22 : vector<2x40xf32>
    %cst_17 = arith.constant 1.000000e+00 : f32
    %24 = vector.broadcast %cst_17 : f32 to vector<2x40xf32>
    %25 = arith.addf %24, %23 : vector<2x40xf32>
    %26 = arith.divf %24, %25 : vector<2x40xf32>
    %c0_18 = arith.constant 0 : index
    %c0_19 = arith.constant 0 : index
    %27 = vector.load %arg8[%c0_18, %c0_19] : memref<40x40xf32, #tpu.memory_space<vmem>>, vector<40x40xf32>
    %cst_20 = arith.constant dense<0.000000e+00> : vector<6x40xf32>
    %28 = tpu.matmul %9, %27, %cst_20 {dimension_numbers = #tpu.dot_dimension_numbers<[1], [0], [0], [1], [0, 0, 1, 1], [], []>} : vector<6x40xf32>, vector<40x40xf32>, vector<6x40xf32> -> vector<6x40xf32>
    %c0_21 = arith.constant 0 : index
    %c0_22 = arith.constant 0 : index
    %29 = vector.load %arg1[%c0_21, %c0_22] : memref<6x10xf32, #tpu.memory_space<vmem>>, vector<6x10xf32>
    %c0_23 = arith.constant 0 : index
    %c0_24 = arith.constant 0 : index
    %30 = vector.load %arg9[%c0_23, %c0_24] : memref<10x40xf32, #tpu.memory_space<vmem>>, vector<10x40xf32>
    %cst_25 = arith.constant dense<0.000000e+00> : vector<6x40xf32>
    %31 = tpu.matmul %29, %30, %cst_25 {dimension_numbers = #tpu.dot_dimension_numbers<[1], [0], [0], [1], [0, 0, 1, 1], [], []>} : vector<6x10xf32>, vector<10x40xf32>, vector<6x40xf32> -> vector<6x40xf32>
    %32 = arith.addf %28, %31 : vector<6x40xf32>
    %c0_26 = arith.constant 0 : index
    %c0_27 = arith.constant 0 : index
    %33 = vector.load %arg10[%c0_26, %c0_27] : memref<1x40xf32, #tpu.memory_space<vmem>>, vector<1x40xf32>
    %34 = vector.broadcast %33 : vector<1x40xf32> to vector<6x40xf32>
    %35 = arith.addf %32, %34 : vector<6x40xf32>
    %cst_28 = arith.constant 0.000000e+00 : f32
    %36 = vector.broadcast %cst_28 : f32 to vector<6x40xf32>
    %37 = arith.maximumf %35, %36 : vector<6x40xf32>
    %c0_29 = arith.constant 0 : index
    %c0_30 = arith.constant 0 : index
    %38 = vector.load %arg11[%c0_29, %c0_30] : memref<40x40xf32, #tpu.memory_space<vmem>>, vector<40x40xf32>
    %cst_31 = arith.constant dense<0.000000e+00> : vector<6x40xf32>
    %39 = tpu.matmul %37, %38, %cst_31 {dimension_numbers = #tpu.dot_dimension_numbers<[1], [0], [0], [1], [0, 0, 1, 1], [], []>} : vector<6x40xf32>, vector<40x40xf32>, vector<6x40xf32> -> vector<6x40xf32>
    %c0_32 = arith.constant 0 : index
    %c0_33 = arith.constant 0 : index
    %40 = vector.load %arg12[%c0_32, %c0_33] : memref<1x40xf32, #tpu.memory_space<vmem>>, vector<1x40xf32>
    %41 = vector.broadcast %40 : vector<1x40xf32> to vector<6x40xf32>
    %42 = arith.addf %39, %41 : vector<6x40xf32>
    %43 = arith.negf %42 : vector<6x40xf32>
    %44 = math.exp %43 : vector<6x40xf32>
    %cst_34 = arith.constant 1.000000e+00 : f32
    %45 = vector.broadcast %cst_34 : f32 to vector<6x40xf32>
    %46 = arith.addf %45, %44 : vector<6x40xf32>
    %47 = arith.divf %45, %46 : vector<6x40xf32>
    %48 = vector.extract_strided_slice %47 {offsets = [0, 0], sizes = [6, 20], strides = [1, 1]} : vector<6x40xf32> to vector<6x20xf32>
    %49 = vector.extract_strided_slice %47 {offsets = [0, 20], sizes = [6, 20], strides = [1, 1]} : vector<6x40xf32> to vector<6x20xf32>
    %50 = tpu.iota {dimensions = array<i32: 0>} : vector<2x6xi32>
    %51 = tpu.iota {dimensions = array<i32: 1>} : vector<2x6xi32>
    %52 = arith.cmpi eq, %51, %50 : vector<2x6xi32>
    %c2_i32 = arith.constant 2 : i32
    %53 = vector.broadcast %c2_i32 : i32 to vector<2x6xi32>
    %54 = arith.addi %50, %53 : vector<2x6xi32>
    %55 = arith.cmpi eq, %51, %54 : vector<2x6xi32>
    %56 = arith.ori %52, %55 : vector<2x6xi1>
    %c4_i32 = arith.constant 4 : i32
    %57 = vector.broadcast %c4_i32 : i32 to vector<2x6xi32>
    %58 = arith.addi %50, %57 : vector<2x6xi32>
    %59 = arith.cmpi eq, %51, %58 : vector<2x6xi32>
    %60 = arith.ori %56, %59 : vector<2x6xi1>
    %61 = vector.extract_strided_slice %26 {offsets = [0, 0], sizes = [2, 20], strides = [1, 1]} : vector<2x40xf32> to vector<2x20xf32>
    %cst_35 = arith.constant dense<0.000000e+00> : vector<2x6xf32>
    %62 = tpu.matmul %61, %48, %cst_35 {dimension_numbers = #tpu.dot_dimension_numbers<[1], [1], [0], [0], [0, 0, 1, 0], [], []>} : vector<2x20xf32>, vector<6x20xf32>, vector<2x6xf32> -> vector<2x6xf32>
    %cst_36 = arith.constant -1.000000e+30 : f32
    %63 = vector.broadcast %cst_36 : f32 to vector<2x6xf32>
    %64 = arith.select %60, %62, %63 : vector<2x6xi1>, vector<2x6xf32>
    %cst_37 = arith.constant dense<0xFF800000> : vector<2xf32>
    %65 = vector.multi_reduction <maximumf>, %64, %cst_37 [1] : vector<2x6xf32> to vector<2xf32>
    %66 = vector.shape_cast %65 : vector<2xf32> to vector<2x1xf32>
    %67 = vector.broadcast %66 : vector<2x1xf32> to vector<2x6xf32>
    %68 = arith.subf %64, %67 : vector<2x6xf32>
    %69 = math.exp %68 : vector<2x6xf32>
    %cst_38 = arith.constant dense<0.000000e+00> : vector<2xf32>
    %70 = vector.multi_reduction <add>, %69, %cst_38 [1] : vector<2x6xf32> to vector<2xf32>
    %71 = vector.shape_cast %70 : vector<2xf32> to vector<2x1xf32>
    %72 = tpu.reciprocal %71 {approx = true} : vector<2x1xf32> -> vector<2x1xf32>
    %73 = vector.broadcast %72 : vector<2x1xf32> to vector<2x6xf32>
    %74 = arith.mulf %69, %73 : vector<2x6xf32>
    %cst_39 = arith.constant dense<0.000000e+00> : vector<2x20xf32>
    %75 = tpu.matmul %74, %49, %cst_39 {dimension_numbers = #tpu.dot_dimension_numbers<[1], [0], [0], [1], [0, 0, 1, 1], [], []>} : vector<2x6xf32>, vector<6x20xf32>, vector<2x20xf32> -> vector<2x20xf32>
    %76 = vector.extract_strided_slice %26 {offsets = [0, 20], sizes = [2, 20], strides = [1, 1]} : vector<2x40xf32> to vector<2x20xf32>
    %cst_40 = arith.constant dense<0.000000e+00> : vector<2x6xf32>
    %77 = tpu.matmul %76, %48, %cst_40 {dimension_numbers = #tpu.dot_dimension_numbers<[1], [1], [0], [0], [0, 0, 1, 0], [], []>} : vector<2x20xf32>, vector<6x20xf32>, vector<2x6xf32> -> vector<2x6xf32>
    %cst_41 = arith.constant -1.000000e+30 : f32
    %78 = vector.broadcast %cst_41 : f32 to vector<2x6xf32>
    %79 = arith.select %60, %77, %78 : vector<2x6xi1>, vector<2x6xf32>
    %cst_42 = arith.constant dense<0xFF800000> : vector<2xf32>
    %80 = vector.multi_reduction <maximumf>, %79, %cst_42 [1] : vector<2x6xf32> to vector<2xf32>
    %81 = vector.shape_cast %80 : vector<2xf32> to vector<2x1xf32>
    %82 = vector.broadcast %81 : vector<2x1xf32> to vector<2x6xf32>
    %83 = arith.subf %79, %82 : vector<2x6xf32>
    %84 = math.exp %83 : vector<2x6xf32>
    %cst_43 = arith.constant dense<0.000000e+00> : vector<2xf32>
    %85 = vector.multi_reduction <add>, %84, %cst_43 [1] : vector<2x6xf32> to vector<2xf32>
    %86 = vector.shape_cast %85 : vector<2xf32> to vector<2x1xf32>
    %87 = tpu.reciprocal %86 {approx = true} : vector<2x1xf32> -> vector<2x1xf32>
    %88 = vector.broadcast %87 : vector<2x1xf32> to vector<2x6xf32>
    %89 = arith.mulf %84, %88 : vector<2x6xf32>
    %cst_44 = arith.constant dense<0.000000e+00> : vector<2x20xf32>
    %90 = tpu.matmul %89, %49, %cst_44 {dimension_numbers = #tpu.dot_dimension_numbers<[1], [0], [0], [1], [0, 0, 1, 1], [], []>} : vector<2x6xf32>, vector<6x20xf32>, vector<2x20xf32> -> vector<2x20xf32>
    %c0_45 = arith.constant 0 : index
    %c0_46 = arith.constant 0 : index
    %91 = vector.load %arg13[%c0_45, %c0_46] : memref<20x10xf32, #tpu.memory_space<vmem>>, vector<20x10xf32>
    %cst_47 = arith.constant dense<0.000000e+00> : vector<2x10xf32>
    %92 = tpu.matmul %75, %91, %cst_47 {dimension_numbers = #tpu.dot_dimension_numbers<[1], [0], [0], [1], [0, 0, 1, 1], [], []>, precision = #tpu.contract_precision<fp32>} : vector<2x20xf32>, vector<20x10xf32>, vector<2x10xf32> -> vector<2x10xf32>
    %c0_48 = arith.constant 0 : index
    %c0_49 = arith.constant 0 : index
    %93 = vector.load %arg14[%c0_48, %c0_49] : memref<20x10xf32, #tpu.memory_space<vmem>>, vector<20x10xf32>
    %cst_50 = arith.constant dense<0.000000e+00> : vector<2x10xf32>
    %94 = tpu.matmul %90, %93, %cst_50 {dimension_numbers = #tpu.dot_dimension_numbers<[1], [0], [0], [1], [0, 0, 1, 1], [], []>, precision = #tpu.contract_precision<fp32>} : vector<2x20xf32>, vector<20x10xf32>, vector<2x10xf32> -> vector<2x10xf32>
    %95 = arith.addf %92, %94 : vector<2x10xf32>
    %c0_51 = arith.constant 0 : index
    %c0_52 = arith.constant 0 : index
    %96 = vector.load %arg15[%c0_51, %c0_52] : memref<1x10xf32, #tpu.memory_space<vmem>>, vector<1x10xf32>
    %97 = vector.broadcast %96 : vector<1x10xf32> to vector<2x10xf32>
    %98 = arith.addf %95, %97 : vector<2x10xf32>
    %cst_53 = arith.constant dense<0xFF800000> : vector<2xf32>
    %99 = vector.multi_reduction <maximumf>, %98, %cst_53 [1] : vector<2x10xf32> to vector<2xf32>
    %100 = vector.shape_cast %99 : vector<2xf32> to vector<2x1xf32>
    %101 = vector.broadcast %100 : vector<2x1xf32> to vector<2x10xf32>
    %102 = arith.subf %98, %101 : vector<2x10xf32>
    %103 = math.exp %102 : vector<2x10xf32>
    %cst_54 = arith.constant dense<0.000000e+00> : vector<2xf32>
    %104 = vector.multi_reduction <add>, %103, %cst_54 [1] : vector<2x10xf32> to vector<2xf32>
    %105 = vector.shape_cast %104 : vector<2xf32> to vector<2x1xf32>
    %106 = math.log %105 : vector<2x1xf32>
    %107 = vector.broadcast %106 : vector<2x1xf32> to vector<2x10xf32>
    %108 = arith.subf %102, %107 : vector<2x10xf32>
    %c0_55 = arith.constant 0 : index
    %c0_56 = arith.constant 0 : index
    %109 = vector.load %arg16[%c0_55, %c0_56] : memref<2x10xf32, #tpu.memory_space<vmem>>, vector<2x10xf32>
    tpu.vector_store %arg16[%c0_55, %c0_56], %108 {strides = array<i32>} : memref<2x10xf32, #tpu.memory_space<vmem>>, vector<2x10xf32>,
    return
  }
}

</mosaic_0001>

<bundles_post_ra>
// kernel: _lambda_.3
= control target key start
LH: loop header
LB: loop body
LE: loop exit
PB: predicated region body
PF: predicated region fallthrough
CT: control target
= control target key end

     0   :  { %vm59_vm0 = vcmask 1040384   ;;  %v2391_v3 = vmov 0.0   ;;  %v2392_v8 = vmov 0   ;;  %vm2393_vm1 = vmmov 1   ;;  %s3201_s2 = inlined_call_operand.vmem [shape: f32[4,25,1152], index: 2, kind: input, shape index: {}]   ;;  %s3202_s0 = inlined_call_operand.vmem [shape: f32[10,25], index: 0, kind: input, shape index: {}]   ;;  %s3203_s1 = inlined_call_operand.vmem [shape: f32[10,1], index: 1, kind: input, shape index: {}]   ;;  %s3204_s3 = inlined_call_operand.vmem [shape: f32[10,1152], index: 3, kind: output, shape index: {}]  }
   0x1   :  { %v17_v0 = vld [vmem:[%s3201_s2 + $0x8] sm:$0xff]  ;;  %v26_v1 = vld [vmem:[%s3201_s2 + $0x50] sm:$0xff]  ;;  %v19_v2 = vld [vmem:[%s3201_s2 + $0x18] sm:$0xff]  ;;  %151 = vmatprep.mubr.f32.mxu0 %v2391_v3  ;;  %228 = vmatprep.mubr.f32.mxu1 %v2391_v3  ;;  %vm52_vm3 = vcmask 203776  }
   0x2   :  { %v2187_v4 = vpack.c.bf16 %v26_v1, %v17_v0  ;;  %v28_v5 = vld [vmem:[%s3201_s2 + $0x60] sm:$0xff]  ;;  %v25_v7 = vld [vmem:[%s3201_s2 + $0x48] sm:$0xff]  ;;  %2390 = vset.pattern.permute.xlu0 %v2392_v8  ;;  %v18_v11 = vld [vmem:[%s3201_s2 + $0x10] sm:$0xff] }
   0x3   :  { %v16_v6 = vld [vmem:[%s3201_s2] sm:$0xff]  ;;  %v2197_v9 = vpack.c.bf16 %v28_v5, %v19_v2  ;;  %v27_v12 = vld [vmem:[%s3201_s2 + $0x58] sm:$0xff]  ;;  %vm2447_vm2 = vmpackc.low %vm59_vm0, %vm2393_vm1 }
   0x4   :  { %v2189_v10 = vpack.c.bf16 %v25_v7, %v16_v6  ;;  %v35_v13 = vld [vmem:[%s3201_s2 + $0x98] sm:$0xff]  ;;  %2188 = vmatprep.subr.bf16.mxu0 %v2187_v4  ;;  %v2199_v14 = vpack.c.bf16 %v27_v12, %v18_v11  ;;  %v44_v15 = vld [vmem:[%s3201_s2 + $0xe0] sm:$0x1]  ;;  %v37_v17 = vld [vmem:[%s3201_s2 + $0xa8] sm:$0xff] }
   0x5   :  { %2198 = vmatprep.subr.bf16.mxu1 %v2197_v9  ;;  %v2191_v18 = vpack.c.bf16 %v44_v15, %v35_v13  ;;  %v46_v19 = vld [vmem:[%s3201_s2 + $0xf0] sm:$0x1]  ;;  %v43_v21 = vld [vmem:[%s3201_s2 + $0xd8] sm:$0x1]  ;;  %v36_v24 = vld [vmem:[%s3201_s2 + $0xa0] sm:$0xff] }
   0x6   :  { %2190 = vmatpush1.bf16.msra.mxu0 %v2189_v10  ;;  %v34_v20 = vld [vmem:[%s3201_s2 + $0x90] sm:$0xff]  ;;  %2200 = vmatpush1.bf16.msra.mxu1 %v2199_v14  ;;  %v2201_v22 = vpack.c.bf16 %v46_v19, %v37_v17  ;;  %v45_v25 = vld [vmem:[%s3201_s2 + $0xe8] sm:$0x1]  ;;  %v23_v29 = vld [vmem:[%s3201_s2 + $0x38] sm:$0xff] }
   0x7   :  { %v2194_v23 = vpack.c.bf16 %v43_v21, %v34_v20  ;;  %2193 = vmatprep.subr.msk.bf16.mxu0 %vm2447_vm2, %v2191_v18  ;;  %v2204_v26 = vpack.c.bf16 %v45_v25, %v36_v24  ;;  %v21_v27 = vld [vmem:[%s3201_s2 + $0x28] sm:$0xff]  ;;  %v30_v28 = vld [vmem:[%s3201_s2 + $0x70] sm:$0xff]  ;;  %v32_v31 = vld [vmem:[%s3201_s2 + $0x80] sm:$0xff] }
   0x8   :  { %2203 = vmatprep.subr.msk.bf16.mxu1 %vm2447_vm2, %v2201_v22  ;;  %v2207_v30 = vpack.c.bf16 %v30_v28, %v21_v27  ;;  %v20_v32 = vld [vmem:[%s3201_s2 + $0x20] sm:$0xff]  ;;  %v29_v33 = vld [vmem:[%s3201_s2 + $0x68] sm:$0xff]  ;;  %v2217_v35 = vpack.c.bf16 %v32_v31, %v23_v29  ;;  %v22_v37 = vld [vmem:[%s3201_s2 + $0x30] sm:$0xff] }
   0x9   :  { %v2496_v34 = vld [vmem:[%s3202_s0] sm:$0xff]  ;;  %v2209_v36 = vpack.c.bf16 %v29_v33, %v20_v32  ;;  %v31_v38 = vld [vmem:[%s3201_s2 + $0x78] sm:$0xff]  ;;  %v41_v42 = vld [vmem:[%s3201_s2 + $0xc8] sm:$0xff] }
   0xa   :  { %2196 = vmatpush1.bf16.msk.msra.mxu0 %vm2447_vm2, %v2194_v23  ;;  %2206 = vmatpush1.bf16.msk.msra.mxu1 %vm2447_vm2, %v2204_v26  ;;  %v2219_v39 = vpack.c.bf16 %v31_v38, %v22_v37  ;;  %v39_v40 = vld [vmem:[%s3201_s2 + $0xb8] sm:$0xff]  ;;  %v48_v41 = vld [vmem:[%s3201_s2 + $0x100] sm:$0x1]  ;;  %v2518_v43 = vld [vmem:[%s3202_s0 + $0x8] sm:$0x3] }
   0xb   :  { %2208 = vmatprep.subr.bf16.mxu0 %v2207_v30  ;;  %2218 = vmatprep.subr.bf16.mxu1 %v2217_v35  ;;  %v2211_v44 = vpack.c.bf16 %v48_v41, %v39_v40  ;;  %v50_v45 = vld [vmem:[%s3201_s2 + $0x110] sm:$0x1]  ;;  %v47_v47 = vld [vmem:[%s3201_s2 + $0xf8] sm:$0x1]  ;;  %v40_v49 = vld [vmem:[%s3201_s2 + $0xc0] sm:$0xff] }
   0xc   :  { %v38_v46 = vld [vmem:[%s3201_s2 + $0xb0] sm:$0xff]  ;;  %v2221_v48 = vpack.c.bf16 %v50_v45, %v41_v42  ;;  %v49_v50 = vld [vmem:[%s3201_s2 + $0x108] sm:$0x1]  ;;  %v24_v51 = vld [vmem:[%s3201_s2 + $0x40] sm:$0xff] }
   0xd   :  { %1937 = vmatmul.mubr.msk.f32.vlgmr.msra.gmra.mrb[0].mxu0 %vm52_vm3, %v2496_v34  ;;  %1941 = vmatmul.mubr.msk.f32.vlgmr.msra.gmra.mrb[0].mxu1 %vm52_vm3, %v2496_v34  ;;  %v2214_v52 = vpack.c.bf16 %v47_v47, %v38_v46  ;;  %v33_v53 = vld [vmem:[%s3201_s2 + $0x88] sm:$0xff]  ;;  %v1964_v55 = vld [vmem:[%s3201_s2 + $0x170] sm:$0xff]  ;;  %v2224_v56 = vpack.c.bf16 %v49_v50, %v40_v49  ;;  %v1954_v58 = vld [vmem:[%s3201_s2 + $0x120] sm:$0xff] }
   0xe   :  { %2210 = vmatpush1.bf16.msra.mxu0 %v2209_v36  ;;  %v1955_v54 = vld [vmem:[%s3201_s2 + $0x128] sm:$0xff]  ;;  %2220 = vmatpush1.bf16.msra.mxu1 %v2219_v39  ;;  %v2227_v57 = vpack.c.bf16 %v33_v53, %v24_v51  ;;  %v42_v61 = vld [vmem:[%s3201_s2 + $0xd0] sm:$0xff]  ;;  %v51_v62 = vld [vmem:[%s3201_s2 + $0x118] sm:$0x1] }
   0xf   :  { %157 = vmatprep.mubr.f32.mxu0 %v2391_v3  ;;  %234 = vmatprep.mubr.f32.mxu1 %v2391_v3  ;;  %v1963_v59 = vld [vmem:[%s3201_s2 + $0x168] sm:$0xff]  ;;  %v2237_v60 = vpack.c.bf16 %v1964_v55, %v1955_v54  ;;  %v1973_v63 = vld [vmem:[%s3201_s2 + $0x1b8] sm:$0xff]  ;;  %v1982_v0 = vld [vmem:[%s3201_s2 + $0x200] sm:$0x1]  ;;  %v2231_v2 = vpack.c.bf16 %v51_v62, %v42_v61 }
  0x10   :  { %2213 = vmatprep.subr.msk.bf16.mxu0 %vm2447_vm2, %v2211_v44  ;;  %2223 = vmatprep.subr.msk.bf16.mxu1 %vm2447_vm2, %v2221_v48  ;;  %v2239_v1 = vpack.c.bf16 %v1963_v59, %v1954_v58  ;;  %v1972_v4 = vld [vmem:[%s3201_s2 + $0x1b0] sm:$0xff]  ;;  %v1981_v5 = vld [vmem:[%s3201_s2 + $0x1f8] sm:$0x1]  ;;  %v2241_v6 = vpack.c.bf16 %v1982_v0, %v1973_v63  ;;  %v1966_v8 = vld [vmem:[%s3201_s2 + $0x180] sm:$0xff] }
  0x11   :  { %1938 = vmatmul.mubr.msk.f32.gmra.mrb[2].mxu0 %vm52_vm3, %v2518_v43  ;;  %1942 = vmatmul.mubr.msk.f32.gmra.mrb[2].mxu1 %vm52_vm3, %v2518_v43  ;;  %v1957_v7 = vld [vmem:[%s3201_s2 + $0x138] sm:$0xff]  ;;  %v1959_v9 = vld [vmem:[%s3201_s2 + $0x148] sm:$0xff]  ;;  %v1968_v10 = vld [vmem:[%s3201_s2 + $0x190] sm:$0xff]  ;;  %v2244_v11 = vpack.c.bf16 %v1981_v5, %v1972_v4 }
  0x12   :  { %2216 = vmatpush1.bf16.msk.msra.mxu0 %vm2447_vm2, %v2214_v52  ;;  %2226 = vmatpush1.bf16.msk.msra.mxu1 %vm2447_vm2, %v2224_v56  ;;  %v1956_v12 = vld [vmem:[%s3201_s2 + $0x130] sm:$0xff]  ;;  %v1965_v13 = vld [vmem:[%s3201_s2 + $0x178] sm:$0xff]  ;;  %v2247_v14 = vpack.c.bf16 %v1966_v8, %v1957_v7  ;;  %v1958_v15 = vld [vmem:[%s3201_s2 + $0x140] sm:$0xff]  ;;  %v2257_v19 = vpack.c.bf16 %v1968_v10, %v1959_v9 }
  0x13   :  { %305 = vmatprep.mubr.f32.mxu0 %v2391_v3  ;;  %382 = vmatprep.mubr.f32.mxu1 %v2391_v3  ;;  %v1967_v17 = vld [vmem:[%s3201_s2 + $0x188] sm:$0xff]  ;;  %v1984_v20 = vld [vmem:[%s3201_s2 + $0x210] sm:$0x1]  ;;  %v1977_v21 = vld [vmem:[%s3201_s2 + $0x1d8] sm:$0xff]  ;;  %v2249_v23 = vpack.c.bf16 %v1965_v13, %v1956_v12 }
  0x14   :  { %2228 = vmatprep.subr.bf16.mxu0 %v2227_v57  ;;  %2238 = vmatprep.subr.bf16.mxu1 %v2237_v60  ;;  %v1975_v18 = vld [vmem:[%s3201_s2 + $0x1c8] sm:$0xff]  ;;  %v1986_v22 = vld [vmem:[%s3201_s2 + $0x220] sm:$0x1]  ;;  %v2259_v24 = vpack.c.bf16 %v1967_v17, %v1958_v15  ;;  %v1976_v29 = vld [vmem:[%s3201_s2 + $0x1d0] sm:$0xff] }
  0x15   :  { %1945 = vmatmul.mubr.msk.f32.vlgmr.msra.gmra.mrb[4].mxu0 %vm52_vm3, %v2496_v34  ;;  %1949 = vmatmul.mubr.msk.f32.vlgmr.msra.gmra.mrb[4].mxu1 %vm52_vm3, %v2496_v34  ;;  %v1974_v25 = vld [vmem:[%s3201_s2 + $0x1c0] sm:$0xff]  ;;  %v1983_v26 = vld [vmem:[%s3201_s2 + $0x208] sm:$0x1]  ;;  %v2251_v27 = vpack.c.bf16 %v1984_v20, %v1975_v18  ;;  %v2261_v28 = vpack.c.bf16 %v1986_v22, %v1977_v21  ;;  %v1985_v30 = vld [vmem:[%s3201_s2 + $0x218] sm:$0x1] }
  0x16   :  { %2230 = vmatpush3.bf16.msra.mxu0 %v2227_v57  ;;  %2240 = vmatpush1.bf16.msra.mxu1 %v2239_v1  ;;  %v1961_v31 = vld [vmem:[%s3201_s2 + $0x158] sm:$0xff]  ;;  %v1970_v32 = vld [vmem:[%s3201_s2 + $0x1a0] sm:$0xff]  ;;  %v1971_v35 = vld [vmem:[%s3201_s2 + $0x1a8] sm:$0xff]  ;;  %v2254_v36 = vpack.c.bf16 %v1983_v26, %v1974_v25  ;;  %v2264_v37 = vpack.c.bf16 %v1985_v30, %v1976_v29 }
  0x17   :  { %311 = vmatprep.mubr.f32.mxu0 %v2391_v3  ;;  %388 = vmatprep.mubr.f32.mxu1 %v2391_v3  ;;  %v1962_v33 = vld [vmem:[%s3201_s2 + $0x160] sm:$0xff]  ;;  %v1960_v38 = vld [vmem:[%s3201_s2 + $0x150] sm:$0xff]  ;;  %v1969_v39 = vld [vmem:[%s3201_s2 + $0x198] sm:$0xff]  ;;  %v2267_v40 = vpack.c.bf16 %v1970_v32, %v1961_v31 }
  0x18   :  { %2233 = vmatprep.subr.msk.bf16.mxu0 %vm2447_vm2, %v2231_v2  ;;  %2243 = vmatprep.subr.msk.bf16.mxu1 %vm2447_vm2, %v2241_v6  ;;  %v2277_v41 = vpack.c.bf16 %v1971_v35, %v1962_v33  ;;  %v1979_v42 = vld [vmem:[%s3201_s2 + $0x1e8] sm:$0xff]  ;;  %v1988_v44 = vld [vmem:[%s3201_s2 + $0x230] sm:$0x1]  ;;  %v2269_v45 = vpack.c.bf16 %v1969_v39, %v1960_v38  ;;  %v1989_v47 = vld [vmem:[%s3201_s2 + $0x238] sm:$0x1] }
  0x19   :  { %1946 = vmatmul.mubr.msk.f32.gmra.mrb[6].mxu0 %vm52_vm3, %v2518_v43  ;;  %1950 = vmatmul.mubr.msk.f32.gmra.mrb[6].mxu1 %vm52_vm3, %v2518_v43  ;;  %v1980_v46 = vld [vmem:[%s3201_s2 + $0x1f0] sm:$0xff]  ;;  %v1978_v48 = vld [vmem:[%s3201_s2 + $0x1e0] sm:$0xff]  ;;  %v1987_v49 = vld [vmem:[%s3201_s2 + $0x228] sm:$0x1]  ;;  %v2271_v50 = vpack.c.bf16 %v1988_v44, %v1979_v42 }
  0x1a   :  { %2236 = vmatpush3.bf16.msk.msra.mxu0 %vm2447_vm2, %v2231_v2  ;;  %2246 = vmatpush1.bf16.msk.msra.mxu1 %vm2447_vm2, %v2244_v11  ;;  %v2281_v51 = vpack.c.bf16 %v1989_v47, %v1980_v46  ;;  %v2010_v52 = vld [vmem:[%s3201_s2 + $0x248] sm:$0xff]  ;;  %v2019_v53 = vld [vmem:[%s3201_s2 + $0x290] sm:$0xff]  ;;  %v2274_v54 = vpack.c.bf16 %v1987_v49, %v1978_v48  ;;  %v2012_v55 = vld [vmem:[%s3201_s2 + $0x258] sm:$0xff] }
  0x1b   :  { %2151 = vmatprep.mubr.msk.f32.mxu0 %vm52_vm3, %v2496_v34  ;;  %598 = vmatprep.mubr.f32.mxu1 %v2391_v3  ;;  %v2021_v56 = vld [vmem:[%s3201_s2 + $0x2a0] sm:$0xff]  ;;  %v2018_v58 = vld [vmem:[%s3201_s2 + $0x288] sm:$0xff]  ;;  %v2287_v59 = vpack.c.bf16 %v2019_v53, %v2010_v52  ;;  %v2011_v60 = vld [vmem:[%s3201_s2 + $0x250] sm:$0xff] }
  0x1c   :  { %2248 = vmatprep.subr.bf16.mxu0 %v2247_v14  ;;  %2258 = vmatprep.subr.bf16.mxu1 %v2257_v19  ;;  %v2009_v57 = vld [vmem:[%s3201_s2 + $0x240] sm:$0xff]  ;;  %v2020_v61 = vld [vmem:[%s3201_s2 + $0x298] sm:$0xff]  ;;  %v2297_v63 = vpack.c.bf16 %v2021_v56, %v2012_v55  ;;  %v2030_v1 = vld [vmem:[%s3201_s2 + $0x2e8] sm:$0xff] }
  0x1d   :  { %2152 = vmatmul.mubr.msk.f32.vlgmr.msra.gmra.mrb[8].mxu0 %vm52_vm3, %v2518_v43  ;;  %1992 = vmatmul.mubr.msk.f32.vlgmr.msra.gmra.mrb[8].mxu1 %vm52_vm3, %v2496_v34  ;;  %v2028_v62 = vld [vmem:[%s3201_s2 + $0x2d8] sm:$0xff]  ;;  %v2037_v0 = vld [vmem:[%s3201_s2 + $0x320] sm:$0x1]  ;;  %v2039_v2 = vld [vmem:[%s3201_s2 + $0x330] sm:$0x1]  ;;  %v2289_v4 = vpack.c.bf16 %v2018_v58, %v2009_v57  ;;  %v2299_v5 = vpack.c.bf16 %v2020_v61, %v2011_v60 }
  0x1e   :  { %2250 = vmatpush1.bf16.msra.mxu0 %v2249_v23  ;;  %2260 = vmatpush1.bf16.msra.mxu1 %v2259_v24  ;;  %v2027_v6 = vld [vmem:[%s3201_s2 + $0x2d0] sm:$0xff]  ;;  %v2036_v7 = vld [vmem:[%s3201_s2 + $0x318] sm:$0x1]  ;;  %v2029_v8 = vld [vmem:[%s3201_s2 + $0x2e0] sm:$0xff]  ;;  %v2291_v9 = vpack.c.bf16 %v2037_v0, %v2028_v62  ;;  %v2301_v10 = vpack.c.bf16 %v2039_v2, %v2030_v1 }
  0x1f   :  { %604 = vmatprep.mubr.f32.mxu1 %v2391_v3  ;;  %2253 = vmatprep.subr.msk.bf16.mxu0 %vm2447_vm2, %v2251_v27  ;;  %v2038_v11 = vld [vmem:[%s3201_s2 + $0x328] sm:$0x1]  ;;  %v2023_v13 = vld [vmem:[%s3201_s2 + $0x2b0] sm:$0xff]  ;;  %v2016_v14 = vld [vmem:[%s3201_s2 + $0x278] sm:$0xff]  ;;  %v2294_v17 = vpack.c.bf16 %v2036_v7, %v2027_v6 }
  0x20   :  { %2263 = vmatprep.subr.msk.bf16.mxu1 %vm2447_vm2, %v2261_v28  ;;  %675 = vmatprep.mubr.f32.mxu0 %v2391_v3  ;;  %v2014_v12 = vld [vmem:[%s3201_s2 + $0x268] sm:$0xff]  ;;  %v2025_v15 = vld [vmem:[%s3201_s2 + $0x2c0] sm:$0xff]  ;;  %v2304_v18 = vpack.c.bf16 %v2038_v11, %v2029_v8  ;;  %v2015_v23 = vld [vmem:[%s3201_s2 + $0x270] sm:$0xff] }
  0x21   :  { %1993 = vmatmul.mubr.msk.f32.gmra.mrb[10].mxu1 %vm52_vm3, %v2518_v43  ;;  %v2307_v19 = vpack.c.bf16 %v2023_v13, %v2014_v12  ;;  %v2013_v20 = vld [vmem:[%s3201_s2 + $0x260] sm:$0xff]  ;;  %v2022_v21 = vld [vmem:[%s3201_s2 + $0x2a8] sm:$0xff]  ;;  %v2317_v22 = vpack.c.bf16 %v2025_v15, %v2016_v14  ;;  %v2024_v24 = vld [vmem:[%s3201_s2 + $0x2b8] sm:$0xff] }
  0x22   :  { %2256 = vmatpush1.bf16.msk.msra.mxu0 %vm2447_vm2, %v2254_v36  ;;  %2266 = vmatpush1.bf16.msk.msra.mxu1 %vm2447_vm2, %v2264_v37  ;;  %v2032_v25 = vld [vmem:[%s3201_s2 + $0x2f8] sm:$0xff]  ;;  %v2041_v26 = vld [vmem:[%s3201_s2 + $0x340] sm:$0x1]  ;;  %v2309_v27 = vpack.c.bf16 %v2022_v21, %v2013_v20  ;;  %v2034_v28 = vld [vmem:[%s3201_s2 + $0x308] sm:$0xff]  ;;  %v2319_v30 = vpack.c.bf16 %v2024_v24, %v2015_v23 }
  0x23   :  { %752 = vmatprep.mubr.f32.mxu1 %v2391_v3  ;;  %2268 = vmatprep.subr.bf16.mxu0 %v2267_v40  ;;  %v2043_v29 = vld [vmem:[%s3201_s2 + $0x350] sm:$0x1]  ;;  %v2040_v32 = vld [vmem:[%s3201_s2 + $0x338] sm:$0x1]  ;;  %v1865_v33 = vld [vmem:[%s3203_s1] sm:$0xff]  ;;  %v2311_v35 = vpack.c.bf16 %v2041_v26, %v2032_v25 }
  0x24   :  { %2278 = vmatprep.subr.bf16.mxu1 %v2277_v41  ;;  %v2031_v31 = vld [vmem:[%s3201_s2 + $0x2f0] sm:$0xff]  ;;  %v2033_v36 = vld [vmem:[%s3201_s2 + $0x300] sm:$0xff]  ;;  %v2042_v37 = vld [vmem:[%s3201_s2 + $0x348] sm:$0x1]  ;;  %1869 = vperm.xlu0 %2390, %v1865_v33   ;;  %v2321_v38 = vpack.c.bf16 %v2043_v29, %v2034_v28 }
  0x25   :  { %1996 = vmatmul.mubr.msk.f32.vlgmr.msra.gmra.mrb[10].mxu0 %vm52_vm3, %v2496_v34  ;;  %2000 = vmatmul.mubr.msk.f32.vlgmr.msra.gmra.mrb[12].mxu1 %vm52_vm3, %v2496_v34  ;;  %v2017_v39 = vld [vmem:[%s3201_s2 + $0x280] sm:$0xff]  ;;  %v2026_v40 = vld [vmem:[%s3201_s2 + $0x2c8] sm:$0xff]  ;;  %v2074_v44 = vld [vmem:[%s3201_s2 + $0x3b0] sm:$0xff] }
  0x26   :  { %2270 = vmatpush1.bf16.msra.mxu0 %v2269_v45  ;;  %2280 = vmatpush3.bf16.msra.mxu1 %v2277_v41  ;;  %v2314_v41 = vpack.c.bf16 %v2040_v32, %v2031_v31  ;;  %v2065_v42 = vld [vmem:[%s3201_s2 + $0x368] sm:$0xff]  ;;  %v2324_v45 = vpack.c.bf16 %v2042_v37, %v2033_v36  ;;  %v2327_v46 = vpack.c.bf16 %v2026_v40, %v2017_v39  ;;  %v2064_v47 = vld [vmem:[%s3201_s2 + $0x360] sm:$0xff]  ;;  %v2083_v52 = vld [vmem:[%s3201_s2 + $0x3f8] sm:$0xff] }
  0x27   :  { %681 = vmatprep.mubr.f32.mxu0 %v2391_v3  ;;  %758 = vmatprep.mubr.f32.mxu1 %v2391_v3  ;;  %v2073_v48 = vld [vmem:[%s3201_s2 + $0x3a8] sm:$0xff]  ;;  %v2337_v49 = vpack.c.bf16 %v2074_v44, %v2065_v42  ;;  %v2092_v53 = vld [vmem:[%s3201_s2 + $0x440] sm:$0x1]  ;;  %v2082_v56 = vld [vmem:[%s3201_s2 + $0x3f0] sm:$0xff] }
  0x28   :  { %2273 = vmatprep.subr.msk.bf16.mxu0 %vm2447_vm2, %v2271_v50  ;;  %2283 = vmatprep.subr.msk.bf16.mxu1 %vm2447_vm2, %v2281_v51  ;;  %v2035_v50 = vld [vmem:[%s3201_s2 + $0x310] sm:$0xff]  ;;  %v2091_v57 = vld [vmem:[%s3201_s2 + $0x438] sm:$0x1]  ;;  %v2341_v58 = vpack.c.bf16 %v2092_v53, %v2083_v52  ;;  %v2076_v60 = vld [vmem:[%s3201_s2 + $0x3c0] sm:$0xff] }
  0x29   :  { %1997 = vmatmul.mubr.msk.f32.gmra.mrb[12].mxu0 %vm52_vm3, %v2518_v43  ;;  %2001 = vmatmul.mubr.msk.f32.gmra.mrb[14].mxu1 %vm52_vm3, %v2518_v43  ;;  %v2069_v61 = vld [vmem:[%s3201_s2 + $0x388] sm:$0xff]  ;;  %v2078_v62 = vld [vmem:[%s3201_s2 + $0x3d0] sm:$0xff]  ;;  %v2075_v1 = vld [vmem:[%s3201_s2 + $0x3b8] sm:$0xff] }
  0x2a   :  { %2276 = vmatpush1.bf16.msk.msra.mxu0 %vm2447_vm2, %v2274_v54  ;;  %2286 = vmatpush3.bf16.msk.msra.mxu1 %vm2447_vm2, %v2281_v51  ;;  %v2044_v51 = vld [vmem:[%s3201_s2 + $0x358] sm:$0x1]  ;;  %v2339_v54 = vpack.c.bf16 %v2073_v48, %v2064_v47  ;;  %v2066_v0 = vld [vmem:[%s3201_s2 + $0x370] sm:$0xff]  ;;  %v2085_v6 = vld [vmem:[%s3201_s2 + $0x408] sm:$0xff]  ;;  %v2357_v7 = vpack.c.bf16 %v2078_v62, %v2069_v61 }
  0x2b   :  { %829 = vmatprep.mubr.f32.mxu0 %v2391_v3  ;;  %2162 = vmatprep.mubr.msk.f32.mxu1 %vm52_vm3, %v2496_v34  ;;  %v2331_v55 = vpack.c.bf16 %v2044_v51, %v2035_v50  ;;  %v2094_v8 = vld [vmem:[%s3201_s2 + $0x450] sm:$0x1]  ;;  %v2349_v11 = vpack.c.bf16 %v2075_v1, %v2066_v0  ;;  %v2084_v13 = vld [vmem:[%s3201_s2 + $0x400] sm:$0xff]  ;;  %v2093_v14 = vld [vmem:[%s3201_s2 + $0x448] sm:$0x1] }
  0x2c   :  { %2288 = vmatprep.subr.bf16.mxu0 %v2287_v59  ;;  %2298 = vmatprep.subr.bf16.mxu1 %v2297_v63  ;;  %v2067_v59 = vld [vmem:[%s3201_s2 + $0x378] sm:$0xff]  ;;  %v2344_v63 = vpack.c.bf16 %v2091_v57, %v2082_v56  ;;  %v2351_v15 = vpack.c.bf16 %v2094_v8, %v2085_v6  ;;  %v2080_v21 = vld [vmem:[%s3201_s2 + $0x3e0] sm:$0xff]  ;;  %v2081_v23 = vld [vmem:[%s3201_s2 + $0x3e8] sm:$0xff]  ;;  %v2354_v24 = vpack.c.bf16 %v2093_v14, %v2084_v13 }
  0x2d   :  { %2004 = vmatmul.mubr.msk.f32.vlgmr.msra.gmra.mrb[14].mxu0 %vm52_vm3, %v2496_v34  ;;  %2163 = vmatmul.mubr.msk.f32.vlgmr.msra.gmra.mrb[16].mxu1 %vm52_vm3, %v2518_v43  ;;  %v2347_v2 = vpack.c.bf16 %v2076_v60, %v2067_v59  ;;  %v2071_v20 = vld [vmem:[%s3201_s2 + $0x398] sm:$0xff]  ;;  %v1866_v25 = vld [vmem:[%s3203_s1 + $0x8] sm:$0x3]  ;;  %v2098_v32 = vld [vmem:[%s3201_s2 + $0x470] sm:$0x1] }
  0x2e   :  { %2290 = vmatpush1.bf16.msra.mxu0 %v2289_v4  ;;  %2300 = vmatpush1.bf16.msra.mxu1 %v2299_v5  ;;  %v2068_v4 = vld [vmem:[%s3201_s2 + $0x380] sm:$0xff]  ;;  %v2077_v5 = vld [vmem:[%s3201_s2 + $0x3c8] sm:$0xff]  ;;  %v2079_v28 = vld [vmem:[%s3201_s2 + $0x3d8] sm:$0xff]  ;;  %v2367_v29 = vpack.c.bf16 %v2080_v21, %v2071_v20 }
  0x2f   :  { %835 = vmatprep.mubr.f32.mxu0 %v2391_v3  ;;  %2293 = vmatprep.subr.msk.bf16.mxu0 %vm2447_vm2, %v2291_v9  ;;  %v2087_v9 = vld [vmem:[%s3201_s2 + $0x418] sm:$0xff]  ;;  %v2359_v12 = vpack.c.bf16 %v2077_v5, %v2068_v4  ;;  %v2089_v31 = vld [vmem:[%s3201_s2 + $0x428] sm:$0xff]  ;;  %v2088_v37 = vld [vmem:[%s3201_s2 + $0x420] sm:$0xff] }
  0x30   :  { %2303 = vmatprep.subr.msk.bf16.mxu1 %vm2447_vm2, %v2301_v10  ;;  %1140 = vmatprep.mubr.f32.mxu1 %v2391_v3  ;;  %v2096_v10 = vld [vmem:[%s3201_s2 + $0x460] sm:$0x1]  ;;  %v2099_v36 = vld [vmem:[%s3201_s2 + $0x478] sm:$0x1]  ;;  %v2371_v39 = vpack.c.bf16 %v2098_v32, %v2089_v31 }
  0x31   :  { %2005 = vmatmul.mubr.msk.f32.gmra.mrb[16].mxu0 %vm52_vm3, %v2518_v43  ;;  %1874 = vperm.xlu0 %2390, %v1866_v25  }
  0x32   :  { %2296 = vmatpush1.bf16.msk.msra.mxu0 %vm2447_vm2, %v2294_v17  ;;  %1063 = vmatprep.mubr.f32.mxu0 %v2391_v3  ;;  %v2361_v17 = vpack.c.bf16 %v2096_v10, %v2087_v9 }
  0x33   :  { %2306 = vmatpush1.bf16.msk.msra.mxu1 %vm2447_vm2, %v2304_v18  ;;  %2308 = vmatprep.subr.bf16.mxu0 %v2307_v19  ;;  %v2086_v18 = vld [vmem:[%s3201_s2 + $0x410] sm:$0xff]  ;;  %v2095_v19 = vld [vmem:[%s3201_s2 + $0x458] sm:$0x1] }
  0x34   :  { %2318 = vmatprep.subr.bf16.mxu1 %v2317_v22  ;;  %v2072_v22 = vld [vmem:[%s3201_s2 + $0x3a0] sm:$0xff]  ;;  %v2364_v26 = vpack.c.bf16 %v2095_v19, %v2086_v18 }
  0x35   :  { %2047 = vmatmul.mubr.msk.f32.vlgmr.msra.gmra.mrb[18].mxu0 %vm52_vm3, %v2496_v34 }
  0x36   :  { %2051 = vmatmul.mubr.msk.f32.vlgmr.msra.gmra.mrb[18].mxu1 %vm52_vm3, %v2496_v34  ;;  %2310 = vmatpush1.bf16.msra.mxu0 %v2309_v27  ;;  %v2070_v27 = vld [vmem:[%s3201_s2 + $0x390] sm:$0xff] }
  0x37   :  { %2320 = vmatpush1.bf16.msra.mxu1 %v2319_v30  ;;  %1069 = vmatprep.mubr.f32.mxu0 %v2391_v3  ;;  %v2377_v30 = vpack.c.bf16 %v2081_v23, %v2072_v22  ;;  %v2369_v33 = vpack.c.bf16 %v2079_v28, %v2070_v27 }
  0x38   :  { %1146 = vmatprep.mubr.f32.mxu1 %v2391_v3  ;;  %2313 = vmatprep.subr.msk.bf16.mxu0 %vm2447_vm2, %v2311_v35  ;;  %v2090_v35 = vld [vmem:[%s3201_s2 + $0x430] sm:$0xff] }
  0x39   :  { %2048 = vmatmul.mubr.msk.f32.gmra.mrb[20].mxu0 %vm52_vm3, %v2518_v43  ;;  %2323 = vmatprep.subr.msk.bf16.mxu1 %vm2447_vm2, %v2321_v38  ;;  %v2097_v38 = vld [vmem:[%s3201_s2 + $0x468] sm:$0x1]  ;;  %v2381_v40 = vpack.c.bf16 %v2099_v36, %v2090_v35 }
  0x3a   :  { %2052 = vmatmul.mubr.msk.f32.gmra.mrb[20].mxu1 %vm52_vm3, %v2518_v43  ;;  %2316 = vmatpush1.bf16.msk.msra.mxu0 %vm2447_vm2, %v2314_v41  ;;  %v2374_v41 = vpack.c.bf16 %v2097_v38, %v2088_v37 }
  0x3b   :  { %2326 = vmatpush1.bf16.msk.msra.mxu1 %vm2447_vm2, %v2324_v45  ;;  %1217 = vmatprep.mubr.f32.mxu0 %v2391_v3 }
  0x3c   :  { %1294 = vmatprep.mubr.f32.mxu1 %v2391_v3  ;;  %2328 = vmatprep.subr.bf16.mxu0 %v2327_v46 }
  0x3d   :  { %2055 = vmatmul.mubr.msk.f32.vlgmr.msra.gmra.mrb[22].mxu0 %vm52_vm3, %v2496_v34  ;;  %2338 = vmatprep.subr.bf16.mxu1 %v2337_v49 }
  0x3e   :  { %2059 = vmatmul.mubr.msk.f32.vlgmr.msra.gmra.mrb[22].mxu1 %vm52_vm3, %v2496_v34  ;;  %2330 = vmatpush3.bf16.msra.mxu0 %v2327_v46 }
  0x3f   :  { %2340 = vmatpush1.bf16.msra.mxu1 %v2339_v54  ;;  %1223 = vmatprep.mubr.f32.mxu0 %v2391_v3 }
  0x40   :  { %1300 = vmatprep.mubr.f32.mxu1 %v2391_v3  ;;  %2333 = vmatprep.subr.msk.bf16.mxu0 %vm2447_vm2, %v2331_v55 }
  0x41   :  { %2056 = vmatmul.mubr.msk.f32.gmra.mrb[24].mxu0 %vm52_vm3, %v2518_v43  ;;  %2343 = vmatprep.subr.msk.bf16.mxu1 %vm2447_vm2, %v2341_v58 }
  0x42   :  { %2060 = vmatmul.mubr.msk.f32.gmra.mrb[24].mxu1 %vm52_vm3, %v2518_v43  ;;  %2336 = vmatpush3.bf16.msk.msra.mxu0 %vm2447_vm2, %v2331_v55 }
  0x43   :  { %2346 = vmatpush1.bf16.msk.msra.mxu1 %vm2447_vm2, %v2344_v63  ;;  %2173 = vmatprep.mubr.msk.f32.mxu0 %vm52_vm3, %v2496_v34 }
  0x44   :  { %1528 = vmatprep.mubr.f32.mxu1 %v2391_v3  ;;  %2348 = vmatprep.subr.bf16.mxu0 %v2347_v2 }
  0x45   :  { %2174 = vmatmul.mubr.msk.f32.vlgmr.msra.gmra.mrb[26].mxu0 %vm52_vm3, %v2518_v43  ;;  %2358 = vmatprep.subr.bf16.mxu1 %v2357_v7 }
  0x46   :  { %2102 = vmatmul.mubr.msk.f32.vlgmr.msra.gmra.mrb[26].mxu1 %vm52_vm3, %v2496_v34  ;;  %2350 = vmatpush1.bf16.msra.mxu0 %v2349_v11 }
  0x47   :  { %2360 = vmatpush1.bf16.msra.mxu1 %v2359_v12  ;;  %1534 = vmatprep.mubr.f32.mxu1 %v2391_v3 }
  0x48   :  { %2353 = vmatprep.subr.msk.bf16.mxu0 %vm2447_vm2, %v2351_v15  ;;  %2363 = vmatprep.subr.msk.bf16.mxu1 %vm2447_vm2, %v2361_v17 }
  0x49   :  { %1605 = vmatprep.mubr.f32.mxu0 %v2391_v3 }
  0x4a   :  { %2103 = vmatmul.mubr.msk.f32.gmra.mrb[28].mxu1 %vm52_vm3, %v2518_v43  ;;  %2356 = vmatpush1.bf16.msk.msra.mxu0 %vm2447_vm2, %v2354_v24 }
  0x4b   :  { %2366 = vmatpush1.bf16.msk.msra.mxu1 %vm2447_vm2, %v2364_v26  ;;  %1682 = vmatprep.mubr.f32.mxu1 %v2391_v3 }
  0x4c   :  { %2368 = vmatprep.subr.bf16.mxu0 %v2367_v29  ;;  %2378 = vmatprep.subr.bf16.mxu1 %v2377_v30 }
  0x4d   :  { %2106 = vmatmul.mubr.msk.f32.vlgmr.msra.gmra.mrb[28].mxu0 %vm52_vm3, %v2496_v34 }
  0x4e   :  { %2110 = vmatmul.mubr.msk.f32.vlgmr.msra.gmra.mrb[30].mxu1 %vm52_vm3, %v2496_v34  ;;  %2370 = vmatpush1.bf16.msra.mxu0 %v2369_v33 }
  0x4f   :  { %2380 = vmatpush3.bf16.msra.mxu1 %v2377_v30  ;;  %1611 = vmatprep.mubr.f32.mxu0 %v2391_v3 }
  0x50   :  { %1688 = vmatprep.mubr.f32.mxu1 %v2391_v3  ;;  %2373 = vmatprep.subr.msk.bf16.mxu0 %vm2447_vm2, %v2371_v39 }
  0x51   :  { %2107 = vmatmul.mubr.msk.f32.gmra.mrb[30].mxu0 %vm52_vm3, %v2518_v43  ;;  %2383 = vmatprep.subr.msk.bf16.mxu1 %vm2447_vm2, %v2381_v40 }
  0x52   :  { %2111 = vmatmul.mubr.msk.f32.gmra.mrb[32].mxu1 %vm52_vm3, %v2518_v43  ;;  %2376 = vmatpush1.bf16.msk.msra.mxu0 %vm2447_vm2, %v2374_v41 }
  0x53   :  { %2386 = vmatpush3.bf16.msk.msra.mxu1 %vm2447_vm2, %v2381_v40  ;;  %1759 = vmatprep.mubr.f32.mxu0 %v2391_v3 }
  0x54   :  { %2184 = vmatprep.mubr.msk.f32.mxu1 %vm52_vm3, %v2496_v34 }
  0x55   :  { %2114 = vmatmul.mubr.msk.f32.vlgmr.msra.gmra.mrb[32].mxu0 %vm52_vm3, %v2496_v34 }
  0x56   :  { %2185 = vmatmul.mubr.msk.f32.vlgmr.msra.gmra.mrb[34].mxu1 %vm52_vm3, %v2518_v43  ;;  %1765 = vmatprep.mubr.f32.mxu0 %v2391_v3 }
  0x59   :  { %2115 = vmatmul.mubr.msk.f32.gmra.mrb[34].mxu0 %vm52_vm3, %v2518_v43 }
  0xe0   :  { %v153_v42 = vpop.f32.mrb[0].mxu0  ;;  %v230_v16 = vpop.f32.mrb[0].mxu1 }
  0xe1   :  { %v155_v44 = vpop.f32.mrb[1].mxu0  ;;  %v232_v45 = vpop.f32.mrb[1].mxu1 }
  0xe4   :  { %v159_v46 = vpop.f32.mrb[2].mxu0  ;;  %v236_v48 = vpop.f32.mrb[2].mxu1 }
  0xe5   :  { %v3059_v47 = vpop.f32.mrb[3].mxu0  ;;  %v3061_v49 = vpop.f32.mrb[3].mxu1 }
  0xe8   :  { %v3063_v50 = vpop.f32.mrb[4].mxu0  ;;  %v3067_v51 = vpop.f32.mrb[4].mxu1 }
  0xe9   :  { %v3065_v34 = vpop.f32.mrb[5].mxu0  ;;  %v3069_v3 = vpop.f32.mrb[5].mxu1 }
  0xec   :  { %v3071_v52 = vpop.f32.mrb[6].mxu0  ;;  %v3075_v53 = vpop.f32.mrb[6].mxu1 }
  0xed   :  { %v3073_v43 = vpop.f32.mrb[7].mxu0  ;;  %v3077_v54 = vpop.f32.mrb[7].mxu1 }
  0xf0   :  { %v3079_v55 = vpop.f32.mrb[8].mxu0  ;;  %v600_v56 = vpop.f32.mrb[8].mxu1 }
  0xf1   :  { %v3081_v57 = vpop.f32.mrb[9].mxu0  ;;  %v917_v58 = vmax.f32 %v153_v42, %v600_v56  ;;  %v602_v59 = vpop.f32.mrb[9].mxu1 }
  0xf2   :  { %v918_v60 = vmax.f32 %v155_v44, %v602_v59 }
  0xf4   :  { %v606_v61 = vpop.f32.mrb[10].mxu1 }
  0xf5   :  { %v926_v62 = vmax.f32 %v159_v46, %v606_v61  ;;  %v608_v63 = vpop.f32.mrb[11].mxu1  ;;  %v3111_v61 = vpop.permute.xlu0 %1869 }
  0xf6   :  { %v927_v0 = vmax.f32 %v3059_v47, %v608_v63 }
  0xf8   :  { %v677_v1 = vpop.f32.mrb[10].mxu0  ;;  %v754_v4 = vpop.f32.mrb[12].mxu1 }
  0xf9   :  { %v919_v2 = vmax.f32 %v230_v16, %v677_v1  ;;  %v679_v5 = vpop.f32.mrb[11].mxu0  ;;  %v921_v6 = vmax.f32 %v3063_v50, %v754_v4  ;;  %v756_v8 = vpop.f32.mrb[13].mxu1 }
  0xfa   :  { %v920_v7 = vmax.f32 %v232_v45, %v679_v5  ;;  %v922_v9 = vmax.f32 %v3065_v34, %v756_v8 }
  0xfc   :  { %v683_v10 = vpop.f32.mrb[12].mxu0  ;;  %v760_v12 = vpop.f32.mrb[14].mxu1 }
  0xfd   :  { %v928_v11 = vmax.f32 %v236_v48, %v683_v10  ;;  %v685_v13 = vpop.f32.mrb[13].mxu0  ;;  %v930_v14 = vmax.f32 %v3071_v52, %v760_v12  ;;  %v762_v17 = vpop.f32.mrb[15].mxu1 }
  0xfe   :  { %v929_v15 = vmax.f32 %v3061_v49, %v685_v13  ;;  %v931_v18 = vmax.f32 %v3073_v43, %v762_v17  ;;  %v3119_v10 = vpop.permute.xlu0 %1874 }
 0x100   :  { %v831_v19 = vpop.f32.mrb[14].mxu0  ;;  %v2164_v21 = vpop.f32.mrb[16].mxu1 }
 0x101   :  { %v923_v20 = vmax.f32 %v3067_v51, %v831_v19  ;;  %v833_v22 = vpop.f32.mrb[15].mxu0  ;;  %v934_v23 = vmax.f32 %v3079_v55, %v2164_v21  ;;  %v908_v25 = vpop.f32.mrb[17].mxu1 }
 0x102   :  { %v924_v24 = vmax.f32 %v3069_v3, %v833_v22  ;;  %v925_v26 = vmax.f32 %v3081_v57, %v908_v25 }
 0x104   :  { %v837_v27 = vpop.f32.mrb[16].mxu0 }
 0x105   :  { %v932_v28 = vmax.f32 %v3075_v53, %v837_v27  ;;  %v839_v29 = vpop.f32.mrb[17].mxu0 }
 0x106   :  { %v933_v30 = vmax.f32 %v3077_v54, %v839_v29 }
 0x108   :  { %v1065_v31 = vpop.f32.mrb[18].mxu0 }
 0x109   :  { %v1382_v32 = vmax.f32 %v917_v58, %v1065_v31  ;;  %v1142_v33 = vpop.f32.mrb[18].mxu1  ;;  %v1067_v35 = vpop.f32.mrb[19].mxu0 }
 0x10a   :  { %v1384_v36 = vmax.f32 %v919_v2, %v1142_v33  ;;  %v1383_v37 = vmax.f32 %v918_v60, %v1067_v35  ;;  %v1144_v38 = vpop.f32.mrb[19].mxu1 }
 0x10b   :  { %v1385_v39 = vmax.f32 %v920_v7, %v1144_v38 }
 0x10c   :  { %v1071_v40 = vpop.f32.mrb[20].mxu0 }
 0x10d   :  { %v1391_v41 = vmax.f32 %v926_v62, %v1071_v40  ;;  %v1148_v42 = vpop.f32.mrb[20].mxu1  ;;  %v1073_v44 = vpop.f32.mrb[21].mxu0 }
 0x10e   :  { %v3095_v16 = vmax.f32 %v928_v11, %v1148_v42  ;;  %v1392_v45 = vmax.f32 %v927_v0, %v1073_v44  ;;  %v1150_v46 = vpop.f32.mrb[21].mxu1 }
 0x10f   :  { %v3097_v47 = vmax.f32 %v929_v15, %v1150_v46 }
 0x110   :  { %v1219_v48 = vpop.f32.mrb[22].mxu0 }
 0x111   :  { %v1386_v49 = vmax.f32 %v921_v6, %v1219_v48  ;;  %v1296_v50 = vpop.f32.mrb[22].mxu1  ;;  %v1221_v34 = vpop.f32.mrb[23].mxu0 }
 0x112   :  { %v3099_v51 = vmax.f32 %v923_v20, %v1296_v50  ;;  %v1387_v3 = vmax.f32 %v922_v9, %v1221_v34  ;;  %v1298_v52 = vpop.f32.mrb[23].mxu1 }
 0x113   :  { %v3101_v43 = vmax.f32 %v924_v24, %v1298_v52 }
 0x114   :  { %v1225_v53 = vpop.f32.mrb[24].mxu0 }
 0x115   :  { %v3103_v54 = vmax.f32 %v930_v14, %v1225_v53  ;;  %v1302_v55 = vpop.f32.mrb[24].mxu1  ;;  %v1227_v56 = vpop.f32.mrb[25].mxu0 }
 0x116   :  { %v3105_v57 = vmax.f32 %v932_v28, %v1302_v55  ;;  %v3107_v58 = vmax.f32 %v931_v18, %v1227_v56  ;;  %v1304_v59 = vpop.f32.mrb[25].mxu1 }
 0x117   :  { %v3109_v60 = vmax.f32 %v933_v30, %v1304_v59 }
 0x118   :  { %v2175_v62 = vpop.f32.mrb[26].mxu0 }
 0x119   :  { %v3113_v63 = vmax.f32 %v934_v23, %v2175_v62  ;;  %v1530_v0 = vpop.f32.mrb[26].mxu1  ;;  %v1373_v1 = vpop.f32.mrb[27].mxu0 }
 0x11a   :  { %v1847_v2 = vmax.f32 %v1382_v32, %v1530_v0  ;;  %v3115_v4 = vmax.f32 %v925_v26, %v1373_v1  ;;  %v1532_v5 = vpop.f32.mrb[27].mxu1 }
 0x11b   :  { %v1848_v6 = vmax.f32 %v1383_v37, %v1532_v5 }
 0x11c   :  { %v1877_v7 = vadd.f32 %v3111_v61, %v1847_v2 }
 0x11d   :  { %v1878_v8 = vadd.f32 %v3111_v61, %v1848_v6  ;;  %v1536_v9 = vpop.f32.mrb[28].mxu1 }
 0x11e   :  { %v1895_v11 = vmax.f32 %v1877_v7, 0.0  ;;  %v1856_v12 = vmax.f32 %v1391_v41, %v1536_v9  ;;  %v1538_v13 = vpop.f32.mrb[29].mxu1 }
 0x11f   :  { %v1896_v14 = vmax.f32 %v1878_v8, 0.0  ;;  %v1857_v15 = vmax.f32 %v1392_v45, %v1538_v13 }
 0x120   :  { %1913 = vst [vmem:[%s3204_s3] sm:$0xff] %v1895_v11  ;;  %v1886_v17 = vadd.f32 %v3119_v10, %v1856_v12  ;;  %v1607_v18 = vpop.f32.mrb[28].mxu0 }
 0x121   :  { %1914 = vst [vmem:[%s3204_s3 + $0x8] sm:$0xff] %v1896_v14  ;;  %v1887_v19 = vadd.f32 %v3119_v10, %v1857_v15  ;;  %v1849_v20 = vmax.f32 %v1384_v36, %v1607_v18  ;;  %v1684_v21 = vpop.f32.mrb[30].mxu1  ;;  %v1609_v22 = vpop.f32.mrb[29].mxu0 }
 0x122   :  { %v1904_v23 = vmax.f32 %v1886_v17, 0.0  ;;  %v1851_v24 = vmax.f32 %v1386_v49, %v1684_v21  ;;  %v1850_v25 = vmax.f32 %v1385_v39, %v1609_v22  ;;  %v1686_v26 = vpop.f32.mrb[31].mxu1 }
 0x123   :  { %v1905_v27 = vmax.f32 %v1887_v19, 0.0  ;;  %v1879_v28 = vadd.f32 %v3111_v61, %v1849_v20  ;;  %v1852_v29 = vmax.f32 %v1387_v3, %v1686_v26 }
 0x124   :  { %1922 = vst [vmem:[%s3204_s3 + $0x48] sm:$0x3] %v1904_v23  ;;  %v1881_v30 = vadd.f32 %v3111_v61, %v1851_v24  ;;  %v1880_v31 = vadd.f32 %v3111_v61, %v1850_v25  ;;  %v1613_v32 = vpop.f32.mrb[30].mxu0 }
 0x125   :  { %1923 = vst [vmem:[%s3204_s3 + $0x50] sm:$0x3] %v1905_v27  ;;  %v1897_v33 = vmax.f32 %v1879_v28, 0.0  ;;  %v1882_v35 = vadd.f32 %v3111_v61, %v1852_v29  ;;  %v1858_v36 = vmax.f32 %v3095_v16, %v1613_v32  ;;  %v1690_v37 = vpop.f32.mrb[32].mxu1  ;;  %v1615_v38 = vpop.f32.mrb[31].mxu0 }
 0x126   :  { %v1899_v39 = vmax.f32 %v1881_v30, 0.0  ;;  %v1898_v40 = vmax.f32 %v1880_v31, 0.0  ;;  %v1860_v41 = vmax.f32 %v3103_v54, %v1690_v37  ;;  %v1859_v42 = vmax.f32 %v3097_v47, %v1615_v38  ;;  %v1692_v44 = vpop.f32.mrb[33].mxu1 }
 0x127   :  { %1915 = vst [vmem:[%s3204_s3 + $0x10] sm:$0xff] %v1897_v33  ;;  %v1900_v45 = vmax.f32 %v1882_v35, 0.0  ;;  %v1888_v46 = vadd.f32 %v3119_v10, %v1858_v36  ;;  %v1861_v48 = vmax.f32 %v3107_v58, %v1692_v44 }
 0x128   :  { %1917 = vst [vmem:[%s3204_s3 + $0x20] sm:$0xff] %v1899_v39  ;;  %1916 = vst [vmem:[%s3204_s3 + $0x18] sm:$0xff] %v1898_v40  ;;  %v1890_v16 = vadd.f32 %v3119_v10, %v1860_v41  ;;  %v1889_v47 = vadd.f32 %v3119_v10, %v1859_v42  ;;  %v1761_v49 = vpop.f32.mrb[32].mxu0 }
 0x129   :  { %1918 = vst [vmem:[%s3204_s3 + $0x28] sm:$0xff] %v1900_v45  ;;  %v1906_v50 = vmax.f32 %v1888_v46, 0.0  ;;  %v1891_v34 = vadd.f32 %v3119_v10, %v1861_v48  ;;  %v1853_v3 = vmax.f32 %v3099_v51, %v1761_v49  ;;  %v2186_v52 = vpop.f32.mrb[34].mxu1  ;;  %v1763_v53 = vpop.f32.mrb[33].mxu0 }
 0x12a   :  { %v1908_v54 = vmax.f32 %v1890_v16, 0.0  ;;  %v1907_v55 = vmax.f32 %v1889_v47, 0.0  ;;  %v1864_v56 = vmax.f32 %v3113_v63, %v2186_v52  ;;  %v1854_v58 = vmax.f32 %v3101_v43, %v1763_v53  ;;  %v1838_v59 = vpop.f32.mrb[35].mxu1 }
 0x12b   :  { %1924 = vst [vmem:[%s3204_s3 + $0x58] sm:$0x3] %v1906_v50  ;;  %v1909_v62 = vmax.f32 %v1891_v34, 0.0  ;;  %v1883_v0 = vadd.f32 %v3111_v61, %v1853_v3  ;;  %v1855_v1 = vmax.f32 %v3115_v4, %v1838_v59 }
 0x12c   :  { %1926 = vst [vmem:[%s3204_s3 + $0x68] sm:$0x3] %v1908_v54  ;;  %1925 = vst [vmem:[%s3204_s3 + $0x60] sm:$0x3] %v1907_v55  ;;  %v1894_v51 = vadd.f32 %v3119_v10, %v1864_v56  ;;  %v1884_v43 = vadd.f32 %v3111_v61, %v1854_v58  ;;  %v1767_v63 = vpop.f32.mrb[34].mxu0 }
 0x12d   :  { %1927 = vst [vmem:[%s3204_s3 + $0x70] sm:$0x3] %v1909_v62  ;;  %v1901_v2 = vmax.f32 %v1883_v0, 0.0  ;;  %v1885_v4 = vadd.f32 %v3111_v61, %v1855_v1  ;;  %v1862_v5 = vmax.f32 %v3105_v57, %v1767_v63  ;;  %v1769_v6 = vpop.f32.mrb[35].mxu0 }
 0x12e   :  { %v1912_v7 = vmax.f32 %v1894_v51, 0.0  ;;  %v1902_v8 = vmax.f32 %v1884_v43, 0.0  ;;  %v1863_v9 = vmax.f32 %v3109_v60, %v1769_v6 }
 0x12f   :  { %1919 = vst [vmem:[%s3204_s3 + $0x30] sm:$0xff] %v1901_v2  ;;  %v1903_v11 = vmax.f32 %v1885_v4, 0.0  ;;  %v1892_v12 = vadd.f32 %v3119_v10, %v1862_v5 }
 0x130   :  { %1930 = vst [vmem:[%s3204_s3 + $0x88] sm:$0x3] %v1912_v7  ;;  %1920 = vst [vmem:[%s3204_s3 + $0x38] sm:$0xff] %v1902_v8  ;;  %v1893_v57 = vadd.f32 %v3119_v10, %v1863_v9 }
 0x131   :  { %1921 = vst [vmem:[%s3204_s3 + $0x40] sm:$0xff] %v1903_v11  ;;  %v1910_v60 = vmax.f32 %v1892_v12, 0.0 }
 0x132   :  { %v1911_v61 = vmax.f32 %v1893_v57, 0.0 }
 0x133   :  { %1928 = vst [vmem:[%s3204_s3 + $0x78] sm:$0x3] %v1910_v60 }
 0x134   :  { %1929 = vst [vmem:[%s3204_s3 + $0x80] sm:$0x3] %v1911_v61 }

// kernel: _lambda_.4
= control target key start
LH: loop header
LB: loop body
LE: loop exit
PB: predicated region body
PF: predicated region fallthrough
CT: control target
= control target key end

     0   :  { %v946_v3 = vmov 0   ;;  %vm52_vm0 = vcmask 998400   ;;  %vm62_vm1 = vcmask 1041408   ;;  %vm947_vm2 = vmmov 1   ;;  %s1448_s2 = inlined_call_operand.vmem [shape: f32[4,250,128], index: 2, kind: input, shape index: {}]   ;;  %s1449_s0 = inlined_call_operand.vmem [shape: f32[20,250], index: 0, kind: input, shape index: {}]   ;;  %s1450_s1 = inlined_call_operand.vmem [shape: f32[20,1], index: 1, kind: input, shape index: {}]   ;;  %s1451_s3 = inlined_call_operand.vmem [shape: f32[20,128], index: 3, kind: output, shape index: {}]  }
   0x1   :  { %v36_v0 = vld [vmem:[%s1448_s2 + $0x80] sm:$0xff]  ;;  %v37_v1 = vld [vmem:[%s1448_s2 + $0x88] sm:$0xff]  ;;  %944 = vset.pattern.permute.xlu0 %v946_v3  ;;  %945 = vset.pattern.permute.xlu1 %v946_v3  ;;  %v38_v12 = vld [vmem:[%s1448_s2 + $0x90] sm:$0xff] }
   0x2   :  { %v554_v2 = vld [vmem:[%s1448_s2 + $0x180] sm:$0xff]  ;;  %v810_v4 = vpack.c.bf16 %v37_v1, %v36_v0  ;;  %v555_v5 = vld [vmem:[%s1448_s2 + $0x188] sm:$0xff]  ;;  %v39_v14 = vld [vmem:[%s1448_s2 + $0x98] sm:$0xff] }
   0x3   :  { %v20_v6 = vld [vmem:[%s1448_s2] sm:$0xff]  ;;  %v21_v7 = vld [vmem:[%s1448_s2 + $0x8] sm:$0xff]  ;;  %v843_v8 = vpack.c.bf16 %v555_v5, %v554_v2  ;;  %v556_v15 = vld [vmem:[%s1448_s2 + $0x190] sm:$0xff]  ;;  %v814_v17 = vpack.c.bf16 %v39_v14, %v38_v12 }
   0x4   :  { %v812_v9 = vpack.c.bf16 %v21_v7, %v20_v6  ;;  %v538_v10 = vld [vmem:[%s1448_s2 + $0x100] sm:$0xff]  ;;  %v539_v11 = vld [vmem:[%s1448_s2 + $0x108] sm:$0xff]  ;;  %811 = vmatprep.subr.bf16.mxu0 %v810_v4  ;;  %v557_v16 = vld [vmem:[%s1448_s2 + $0x198] sm:$0xff] }
   0x5   :  { %v845_v13 = vpack.c.bf16 %v539_v11, %v538_v10  ;;  %844 = vmatprep.subr.bf16.mxu1 %v843_v8  ;;  %v847_v18 = vpack.c.bf16 %v557_v16, %v556_v15  ;;  %v22_v19 = vld [vmem:[%s1448_s2 + $0x10] sm:$0xff]  ;;  %v23_v20 = vld [vmem:[%s1448_s2 + $0x18] sm:$0xff]  ;;  %v40_v24 = vld [vmem:[%s1448_s2 + $0xa0] sm:$0xff] }
   0x6   :  { %813 = vmatpush3.bf16.msra.mxu0 %v812_v9  ;;  %v540_v21 = vld [vmem:[%s1448_s2 + $0x110] sm:$0xff]  ;;  %v816_v22 = vpack.c.bf16 %v23_v20, %v22_v19  ;;  %v541_v23 = vld [vmem:[%s1448_s2 + $0x118] sm:$0xff]  ;;  %v41_v25 = vld [vmem:[%s1448_s2 + $0xa8] sm:$0xff] }
   0x7   :  { %846 = vmatpush3.bf16.msra.mxu1 %v845_v13  ;;  %815 = vmatprep.subr.bf16.mxu0 %v814_v17  ;;  %v849_v26 = vpack.c.bf16 %v541_v23, %v540_v21  ;;  %v818_v27 = vpack.c.bf16 %v41_v25, %v40_v24  ;;  %v558_v28 = vld [vmem:[%s1448_s2 + $0x1a0] sm:$0xff]  ;;  %v559_v29 = vld [vmem:[%s1448_s2 + $0x1a8] sm:$0xff]  ;;  %v42_v36 = vld [vmem:[%s1448_s2 + $0xb0] sm:$0xff] }
   0x8   :  { %848 = vmatprep.subr.bf16.mxu1 %v847_v18  ;;  %v24_v30 = vld [vmem:[%s1448_s2 + $0x20] sm:$0xff]  ;;  %v851_v31 = vpack.c.bf16 %v559_v29, %v558_v28  ;;  %v25_v32 = vld [vmem:[%s1448_s2 + $0x28] sm:$0xff]  ;;  %v43_v37 = vld [vmem:[%s1448_s2 + $0xb8] sm:$0xff] }
   0x9   :  { %v542_v33 = vld [vmem:[%s1448_s2 + $0x120] sm:$0xff]  ;;  %v543_v34 = vld [vmem:[%s1448_s2 + $0x128] sm:$0xff]  ;;  %v820_v35 = vpack.c.bf16 %v25_v32, %v24_v30  ;;  %v560_v38 = vld [vmem:[%s1448_s2 + $0x1b0] sm:$0xff]  ;;  %v822_v40 = vpack.c.bf16 %v43_v37, %v42_v36 }
   0xa   :  { %817 = vmatpush3.bf16.msra.mxu0 %v816_v22  ;;  %v853_v39 = vpack.c.bf16 %v543_v34, %v542_v33  ;;  %v561_v41 = vld [vmem:[%s1448_s2 + $0x1b8] sm:$0xff]  ;;  %v26_v42 = vld [vmem:[%s1448_s2 + $0x30] sm:$0xff]  ;;  %v44_v47 = vld [vmem:[%s1448_s2 + $0xc0] sm:$0xff] }
   0xb   :  { %850 = vmatpush3.bf16.msra.mxu1 %v849_v26  ;;  %819 = vmatprep.subr.bf16.mxu0 %v818_v27  ;;  %v27_v43 = vld [vmem:[%s1448_s2 + $0x38] sm:$0xff]  ;;  %v855_v44 = vpack.c.bf16 %v561_v41, %v560_v38  ;;  %v544_v45 = vld [vmem:[%s1448_s2 + $0x130] sm:$0xff]  ;;  %v45_v48 = vld [vmem:[%s1448_s2 + $0xc8] sm:$0xff] }
   0xc   :  { %852 = vmatprep.subr.bf16.mxu1 %v851_v31  ;;  %v545_v46 = vld [vmem:[%s1448_s2 + $0x138] sm:$0xff]  ;;  %v562_v49 = vld [vmem:[%s1448_s2 + $0x1c0] sm:$0xff]  ;;  %v563_v50 = vld [vmem:[%s1448_s2 + $0x1c8] sm:$0xff]  ;;  %v824_v51 = vpack.c.bf16 %v27_v43, %v26_v42  ;;  %v826_v53 = vpack.c.bf16 %v45_v48, %v44_v47 }
   0xd   :  { %v857_v52 = vpack.c.bf16 %v545_v46, %v544_v45  ;;  %v28_v54 = vld [vmem:[%s1448_s2 + $0x40] sm:$0xff]  ;;  %v29_v55 = vld [vmem:[%s1448_s2 + $0x48] sm:$0xff]  ;;  %v859_v57 = vpack.c.bf16 %v563_v50, %v562_v49  ;;  %v46_v59 = vld [vmem:[%s1448_s2 + $0xd0] sm:$0xff] }
   0xe   :  { %821 = vmatpush3.bf16.msra.mxu0 %v820_v35  ;;  %v546_v56 = vld [vmem:[%s1448_s2 + $0x140] sm:$0xff]  ;;  %v547_v58 = vld [vmem:[%s1448_s2 + $0x148] sm:$0xff]  ;;  %v47_v60 = vld [vmem:[%s1448_s2 + $0xd8] sm:$0xff]  ;;  %v828_v63 = vpack.c.bf16 %v29_v55, %v28_v54 }
   0xf   :  { %854 = vmatpush3.bf16.msra.mxu1 %v853_v39  ;;  %823 = vmatprep.subr.bf16.mxu0 %v822_v40  ;;  %v564_v61 = vld [vmem:[%s1448_s2 + $0x1d0] sm:$0xff]  ;;  %v565_v62 = vld [vmem:[%s1448_s2 + $0x1d8] sm:$0xff]  ;;  %v861_v0 = vpack.c.bf16 %v547_v58, %v546_v56  ;;  %v830_v1 = vpack.c.bf16 %v47_v60, %v46_v59  ;;  %v48_v7 = vld [vmem:[%s1448_s2 + $0xe0] sm:$0xff] }
  0x10   :  { %856 = vmatprep.subr.bf16.mxu1 %v855_v44  ;;  %v30_v2 = vld [vmem:[%s1448_s2 + $0x50] sm:$0xff]  ;;  %v31_v3 = vld [vmem:[%s1448_s2 + $0x58] sm:$0xff]  ;;  %v863_v5 = vpack.c.bf16 %v565_v62, %v564_v61  ;;  %v49_v8 = vld [vmem:[%s1448_s2 + $0xe8] sm:$0xff] }
  0x11   :  { %v548_v4 = vld [vmem:[%s1448_s2 + $0x150] sm:$0xff]  ;;  %v549_v6 = vld [vmem:[%s1448_s2 + $0x158] sm:$0xff]  ;;  %v566_v9 = vld [vmem:[%s1448_s2 + $0x1e0] sm:$0xff]  ;;  %v832_v11 = vpack.c.bf16 %v31_v3, %v30_v2  ;;  %v834_v14 = vpack.c.bf16 %v49_v8, %v48_v7 }
  0x12   :  { %825 = vmatpush3.bf16.msra.mxu0 %v824_v51  ;;  %v567_v10 = vld [vmem:[%s1448_s2 + $0x1e8] sm:$0xff]  ;;  %v32_v12 = vld [vmem:[%s1448_s2 + $0x60] sm:$0xff]  ;;  %v865_v13 = vpack.c.bf16 %v549_v6, %v548_v4  ;;  %v50_v20 = vld [vmem:[%s1448_s2 + $0xf0] sm:$0xff] }
  0x13   :  { %858 = vmatpush3.bf16.msra.mxu1 %v857_v52  ;;  %827 = vmatprep.subr.bf16.mxu0 %v826_v53  ;;  %v33_v15 = vld [vmem:[%s1448_s2 + $0x68] sm:$0xff]  ;;  %v550_v16 = vld [vmem:[%s1448_s2 + $0x160] sm:$0xff]  ;;  %v867_v18 = vpack.c.bf16 %v567_v10, %v566_v9  ;;  %v51_v21 = vld [vmem:[%s1448_s2 + $0xf8] sm:$0x3] }
  0x14   :  { %860 = vmatprep.subr.bf16.mxu1 %v859_v57  ;;  %v1136_v17 = vld [vmem:[%s1449_s0 + $0x8] sm:$0xff]  ;;  %v568_v22 = vld [vmem:[%s1448_s2 + $0x1f0] sm:$0xff]  ;;  %v569_v23 = vld [vmem:[%s1448_s2 + $0x1f8] sm:$0x3]  ;;  %v836_v24 = vpack.c.bf16 %v33_v15, %v32_v12  ;;  %v838_v27 = vpack.c.bf16 %v51_v21, %v50_v20 }
  0x15   :  { %v551_v19 = vld [vmem:[%s1448_s2 + $0x168] sm:$0xff]  ;;  %535 = vmatprep.mubr.msk.f32.mxu0 %vm52_vm0, %v1136_v17  ;;  %571 = vmatprep.mubr.msk.f32.mxu1 %vm52_vm0, %v1136_v17  ;;  %vm1157_vm3 = vmpackc.low %vm62_vm1, %vm947_vm2  ;;  %v34_v28 = vld [vmem:[%s1448_s2 + $0x70] sm:$0xff]  ;;  %v871_v31 = vpack.c.bf16 %v569_v23, %v568_v22 }
  0x16   :  { %829 = vmatpush3.bf16.msra.mxu0 %v828_v63  ;;  %v869_v26 = vpack.c.bf16 %v551_v19, %v550_v16  ;;  %v35_v29 = vld [vmem:[%s1448_s2 + $0x78] sm:$0xff]  ;;  %v552_v30 = vld [vmem:[%s1448_s2 + $0x170] sm:$0xff]  ;;  %v590_v33 = vld [vmem:[%s1448_s2 + $0x280] sm:$0xff] }
  0x17   :  { %862 = vmatpush3.bf16.msra.mxu1 %v861_v0  ;;  %831 = vmatprep.subr.bf16.mxu0 %v830_v1  ;;  %v553_v32 = vld [vmem:[%s1448_s2 + $0x178] sm:$0xff]  ;;  %v591_v34 = vld [vmem:[%s1448_s2 + $0x288] sm:$0xff]  ;;  %v626_v35 = vld [vmem:[%s1448_s2 + $0x380] sm:$0xff]  ;;  %v841_v37 = vpack.c.bf16 %v35_v29, %v34_v28 }
  0x18   :  { %864 = vmatprep.subr.bf16.mxu1 %v863_v5  ;;  %v627_v36 = vld [vmem:[%s1448_s2 + $0x388] sm:$0xff]  ;;  %v874_v38 = vpack.c.bf16 %v553_v32, %v552_v30  ;;  %v876_v39 = vpack.c.bf16 %v591_v34, %v590_v33  ;;  %v574_v40 = vld [vmem:[%s1448_s2 + $0x200] sm:$0xff]  ;;  %v592_v45 = vld [vmem:[%s1448_s2 + $0x290] sm:$0xff] }
  0x19   :  { %v575_v41 = vld [vmem:[%s1448_s2 + $0x208] sm:$0xff]  ;;  %v610_v42 = vld [vmem:[%s1448_s2 + $0x300] sm:$0xff]  ;;  %v909_v43 = vpack.c.bf16 %v627_v36, %v626_v35  ;;  %v593_v46 = vld [vmem:[%s1448_s2 + $0x298] sm:$0xff] }
  0x1a   :  { %833 = vmatpush3.bf16.msra.mxu0 %v832_v11  ;;  %v611_v44 = vld [vmem:[%s1448_s2 + $0x308] sm:$0xff]  ;;  %v628_v47 = vld [vmem:[%s1448_s2 + $0x390] sm:$0xff]  ;;  %v629_v48 = vld [vmem:[%s1448_s2 + $0x398] sm:$0xff]  ;;  %v878_v50 = vpack.c.bf16 %v575_v41, %v574_v40  ;;  %v880_v52 = vpack.c.bf16 %v593_v46, %v592_v45 }
  0x1b   :  { %866 = vmatpush3.bf16.msra.mxu1 %v865_v13  ;;  %835 = vmatprep.subr.bf16.mxu0 %v834_v14  ;;  %v1216_v49 = vld [vmem:[%s1449_s0] sm:$0xff]  ;;  %v911_v51 = vpack.c.bf16 %v611_v44, %v610_v42  ;;  %v576_v53 = vld [vmem:[%s1448_s2 + $0x210] sm:$0xff]  ;;  %v577_v54 = vld [vmem:[%s1448_s2 + $0x218] sm:$0xff]  ;;  %v913_v56 = vpack.c.bf16 %v629_v48, %v628_v47 }
  0x1c   :  { %868 = vmatprep.subr.bf16.mxu1 %v867_v18  ;;  %v612_v55 = vld [vmem:[%s1448_s2 + $0x310] sm:$0xff]  ;;  %v613_v57 = vld [vmem:[%s1448_s2 + $0x318] sm:$0xff]  ;;  %v594_v58 = vld [vmem:[%s1448_s2 + $0x2a0] sm:$0xff]  ;;  %v882_v62 = vpack.c.bf16 %v577_v54, %v576_v53 }
  0x1d   :  { %v595_v59 = vld [vmem:[%s1448_s2 + $0x2a8] sm:$0xff]  ;;  %v630_v60 = vld [vmem:[%s1448_s2 + $0x3a0] sm:$0xff]  ;;  %v915_v1 = vpack.c.bf16 %v613_v57, %v612_v55  ;;  %v1259_v5 = vld [vmem:[%s1449_s0 + $0x18] sm:$0xff] }
  0x1e   :  { %837 = vmatpush3.bf16.msra.mxu0 %v836_v24  ;;  %v631_v61 = vld [vmem:[%s1448_s2 + $0x3a8] sm:$0xff]  ;;  %v578_v63 = vld [vmem:[%s1448_s2 + $0x220] sm:$0xff]  ;;  %v884_v2 = vpack.c.bf16 %v595_v59, %v594_v58  ;;  %v596_v7 = vld [vmem:[%s1448_s2 + $0x2b0] sm:$0xff] }
  0x1f   :  { %870 = vmatpush3.bf16.msra.mxu1 %v869_v26  ;;  %840 = vmatprep.subr.msk.bf16.mxu0 %vm1157_vm3, %v838_v27  ;;  %v579_v0 = vld [vmem:[%s1448_s2 + $0x228] sm:$0xff]  ;;  %v614_v3 = vld [vmem:[%s1448_s2 + $0x320] sm:$0xff]  ;;  %v917_v6 = vpack.c.bf16 %v631_v61, %v630_v60  ;;  %v597_v8 = vld [vmem:[%s1448_s2 + $0x2b8] sm:$0xff] }
  0x20   :  { %873 = vmatprep.subr.msk.bf16.mxu1 %vm1157_vm3, %v871_v31  ;;  %v615_v4 = vld [vmem:[%s1448_s2 + $0x328] sm:$0xff]  ;;  %v1272_v9 = vld [vmem:[%s1449_s0 + $0x10] sm:$0xff]  ;;  %v633_v11 = vld [vmem:[%s1448_s2 + $0x3b8] sm:$0xff]  ;;  %v886_v12 = vpack.c.bf16 %v579_v0, %v578_v63  ;;  %v888_v16 = vpack.c.bf16 %v597_v8, %v596_v7 }
  0x21   :  { %v632_v10 = vld [vmem:[%s1448_s2 + $0x3b0] sm:$0xff]  ;;  %v581_v14 = vld [vmem:[%s1448_s2 + $0x238] sm:$0xff]  ;;  %v919_v15 = vpack.c.bf16 %v615_v4, %v614_v3  ;;  %v1299_v20 = vld [vmem:[%s1449_s0 + $0x28] sm:$0xf] }
  0x22   :  { %842 = vmatpush3.bf16.msra.mxu0 %v841_v37  ;;  %v580_v13 = vld [vmem:[%s1448_s2 + $0x230] sm:$0xff]  ;;  %v617_v19 = vld [vmem:[%s1448_s2 + $0x338] sm:$0xff]  ;;  %v921_v21 = vpack.c.bf16 %v633_v11, %v632_v10  ;;  %v598_v22 = vld [vmem:[%s1448_s2 + $0x2c0] sm:$0xff] }
  0x23   :  { %875 = vmatpush3.bf16.msra.mxu1 %v874_v38  ;;  %877 = vmatprep.subr.bf16.mxu0 %v876_v39  ;;  %v616_v18 = vld [vmem:[%s1448_s2 + $0x330] sm:$0xff]  ;;  %v599_v23 = vld [vmem:[%s1448_s2 + $0x2c8] sm:$0xff]  ;;  %v1312_v24 = vld [vmem:[%s1449_s0 + $0x20] sm:$0xf]  ;;  %v890_v28 = vpack.c.bf16 %v581_v14, %v580_v13 }
  0x24   :  { %910 = vmatprep.subr.bf16.mxu1 %v909_v43  ;;  %v634_v26 = vld [vmem:[%s1448_s2 + $0x3c0] sm:$0xff]  ;;  %v635_v27 = vld [vmem:[%s1448_s2 + $0x3c8] sm:$0xff]  ;;  %v923_v31 = vpack.c.bf16 %v617_v19, %v616_v18  ;;  %v892_v32 = vpack.c.bf16 %v599_v23, %v598_v22  ;;  %v505_v35 = vld [vmem:[%s1450_s1 + $0x10] sm:$0xf] }
  0x25   :  { %131 = vmatmul.mubr.f32.vlgmr.msra.gmra.mrb[0].mxu0 %v1216_v49  ;;  %v582_v29 = vld [vmem:[%s1448_s2 + $0x240] sm:$0xff]  ;;  %v583_v30 = vld [vmem:[%s1448_s2 + $0x248] sm:$0xff]  ;;  %v925_v36 = vpack.c.bf16 %v635_v27, %v634_v26  ;;  %v600_v38 = vld [vmem:[%s1448_s2 + $0x2d0] sm:$0xff]  ;;  %518 = vperm.xlu1 %945, %v505_v35  }
  0x26   :  { %247 = vmatmul.mubr.f32.vlgmr.msra.gmra.mrb[0].mxu1 %v1216_v49  ;;  %879 = vmatpush3.bf16.msra.mxu0 %v878_v50  ;;  %v618_v33 = vld [vmem:[%s1448_s2 + $0x340] sm:$0xff]  ;;  %v619_v37 = vld [vmem:[%s1448_s2 + $0x348] sm:$0xff]  ;;  %v601_v39 = vld [vmem:[%s1448_s2 + $0x2d8] sm:$0xff]  ;;  %v894_v42 = vpack.c.bf16 %v583_v30, %v582_v29 }
  0x27   :  { %912 = vmatpush3.bf16.msra.mxu1 %v911_v51  ;;  %881 = vmatprep.subr.bf16.mxu0 %v880_v52  ;;  %v503_v34 = vld [vmem:[%s1450_s1] sm:$0xff]  ;;  %v636_v40 = vld [vmem:[%s1448_s2 + $0x3d0] sm:$0xff]  ;;  %v637_v41 = vld [vmem:[%s1448_s2 + $0x3d8] sm:$0xff]  ;;  %v927_v44 = vpack.c.bf16 %v619_v37, %v618_v33  ;;  %v896_v45 = vpack.c.bf16 %v601_v39, %v600_v38 }
  0x28   :  { %914 = vmatprep.subr.bf16.mxu1 %v913_v56  ;;  %536 = vmatprep.mubr.msk.f32.mxu0 %vm52_vm0, %v1259_v5  ;;  %v504_v43 = vld [vmem:[%s1450_s1 + $0x8] sm:$0xff]  ;;  %v584_v46 = vld [vmem:[%s1448_s2 + $0x250] sm:$0xff]  ;;  %v929_v48 = vpack.c.bf16 %v637_v41, %v636_v40  ;;  %v621_v50 = vld [vmem:[%s1448_s2 + $0x358] sm:$0xff] }
  0x29   :  { %572 = vmatprep.mubr.msk.f32.mxu1 %vm52_vm0, %v1259_v5  ;;  %136 = vmatmul.mubr.f32.gmra.mrb[2].mxu0 %v1272_v9  ;;  %v620_v47 = vld [vmem:[%s1448_s2 + $0x350] sm:$0xff]  ;;  %v602_v51 = vld [vmem:[%s1448_s2 + $0x2e0] sm:$0xff]  ;;  %v603_v52 = vld [vmem:[%s1448_s2 + $0x2e8] sm:$0xff] }
  0x2a   :  { %883 = vmatpush3.bf16.msra.mxu0 %v882_v62  ;;  %252 = vmatmul.mubr.f32.gmra.mrb[2].mxu1 %v1272_v9  ;;  %v638_v53 = vld [vmem:[%s1448_s2 + $0x3e0] sm:$0xff]  ;;  %v639_v54 = vld [vmem:[%s1448_s2 + $0x3e8] sm:$0xff]  ;;  %v931_v56 = vpack.c.bf16 %v621_v50, %v620_v47  ;;  %v900_v57 = vpack.c.bf16 %v603_v52, %v602_v51  ;;  %v604_v63 = vld [vmem:[%s1448_s2 + $0x2f0] sm:$0xff] }
  0x2b   :  { %916 = vmatpush3.bf16.msra.mxu1 %v915_v1  ;;  %885 = vmatprep.subr.bf16.mxu0 %v884_v2  ;;  %v586_v58 = vld [vmem:[%s1448_s2 + $0x260] sm:$0xff]  ;;  %v587_v59 = vld [vmem:[%s1448_s2 + $0x268] sm:$0xff]  ;;  %v933_v61 = vpack.c.bf16 %v639_v54, %v638_v53  ;;  %v605_v0 = vld [vmem:[%s1448_s2 + $0x2f8] sm:$0x3] }
  0x2c   :  { %918 = vmatprep.subr.bf16.mxu1 %v917_v6  ;;  %537 = vmatprep.mubr.msk.f32.mxu0 %vm52_vm0, %v1299_v20  ;;  %v622_v60 = vld [vmem:[%s1448_s2 + $0x360] sm:$0xff]  ;;  %v623_v62 = vld [vmem:[%s1448_s2 + $0x368] sm:$0xff]  ;;  %v640_v1 = vld [vmem:[%s1448_s2 + $0x3f0] sm:$0xff]  ;;  %v902_v3 = vpack.c.bf16 %v587_v59, %v586_v58  ;;  %v904_v6 = vpack.c.bf16 %v605_v0, %v604_v63 }
  0x2d   :  { %573 = vmatprep.mubr.msk.f32.mxu1 %vm52_vm0, %v1299_v20  ;;  %141 = vmatmul.mubr.f32.gmra.mrb[4].mxu0 %v1312_v24  ;;  %v641_v2 = vld [vmem:[%s1448_s2 + $0x3f8] sm:$0x3]  ;;  %v935_v4 = vpack.c.bf16 %v623_v62, %v622_v60  ;;  %v588_v7 = vld [vmem:[%s1448_s2 + $0x270] sm:$0xff] }
  0x2e   :  { %887 = vmatpush3.bf16.msra.mxu0 %v886_v12  ;;  %257 = vmatmul.mubr.f32.gmra.mrb[4].mxu1 %v1312_v24  ;;  %v589_v8 = vld [vmem:[%s1448_s2 + $0x278] sm:$0xff]  ;;  %v937_v10 = vpack.c.bf16 %v641_v2, %v640_v1  ;;  %v624_v11 = vld [vmem:[%s1448_s2 + $0x370] sm:$0xff] }
  0x2f   :  { %920 = vmatpush3.bf16.msra.mxu1 %v919_v15  ;;  %889 = vmatprep.subr.bf16.mxu0 %v888_v16  ;;  %v625_v12 = vld [vmem:[%s1448_s2 + $0x378] sm:$0xff]  ;;  %v907_v13 = vpack.c.bf16 %v589_v8, %v588_v7 }
  0x30   :  { %922 = vmatprep.subr.bf16.mxu1 %v921_v21  ;;  %607 = vmatprep.mubr.msk.f32.mxu0 %vm52_vm0, %v1136_v17  ;;  %v940_v14 = vpack.c.bf16 %v625_v12, %v624_v11 }
  0x31   :  { %643 = vmatprep.mubr.msk.f32.mxu1 %vm52_vm0, %v1136_v17  ;;  %508 = vperm.xlu0 %944, %v503_v34   ;;  %v585_v17 = vld [vmem:[%s1448_s2 + $0x258] sm:$0xff] }
  0x32   :  { %891 = vmatpush3.bf16.msra.mxu0 %v890_v28  ;;  %v898_v55 = vpack.c.bf16 %v585_v17, %v584_v46 }
  0x33   :  { %924 = vmatpush3.bf16.msra.mxu1 %v923_v31  ;;  %893 = vmatprep.subr.bf16.mxu0 %v892_v32 }
  0x34   :  { %926 = vmatprep.subr.bf16.mxu1 %v925_v36 }
  0x35   :  { %513 = vperm.xlu0 %944, %v504_v43  }
  0x36   :  { %895 = vmatpush3.bf16.msra.mxu0 %v894_v42 }
  0x37   :  { %928 = vmatpush3.bf16.msra.mxu1 %v927_v44  ;;  %897 = vmatprep.subr.bf16.mxu0 %v896_v45 }
  0x38   :  { %930 = vmatprep.subr.bf16.mxu1 %v929_v48 }
  0x3a   :  { %899 = vmatpush3.bf16.msra.mxu0 %v898_v55 }
  0x3b   :  { %932 = vmatpush3.bf16.msra.mxu1 %v931_v56  ;;  %901 = vmatprep.subr.bf16.mxu0 %v900_v57 }
  0x3c   :  { %934 = vmatprep.subr.bf16.mxu1 %v933_v61 }
  0x3e   :  { %903 = vmatpush3.bf16.msra.mxu0 %v902_v3 }
  0x3f   :  { %936 = vmatpush3.bf16.msra.mxu1 %v935_v4  ;;  %906 = vmatprep.subr.msk.bf16.mxu0 %vm1157_vm3, %v904_v6 }
  0x40   :  { %939 = vmatprep.subr.msk.bf16.mxu1 %vm1157_vm3, %v937_v10 }
  0x42   :  { %908 = vmatpush3.bf16.msra.mxu0 %v907_v13 }
  0x43   :  { %941 = vmatpush3.bf16.msra.mxu1 %v940_v14 }
  0x45   :  { %366 = vmatmul.mubr.f32.vlgmr.msra.gmra.mrb[6].mxu0 %v1216_v49 }
  0x46   :  { %485 = vmatmul.mubr.f32.vlgmr.msra.gmra.mrb[6].mxu1 %v1216_v49  ;;  %608 = vmatprep.mubr.msk.f32.mxu0 %vm52_vm0, %v1259_v5 }
  0x47   :  { %644 = vmatprep.mubr.msk.f32.mxu1 %vm52_vm0, %v1259_v5 }
  0x49   :  { %371 = vmatmul.mubr.f32.gmra.mrb[8].mxu0 %v1272_v9 }
  0x4a   :  { %490 = vmatmul.mubr.f32.gmra.mrb[8].mxu1 %v1272_v9  ;;  %609 = vmatprep.mubr.msk.f32.mxu0 %vm52_vm0, %v1299_v20 }
  0x4b   :  { %645 = vmatprep.mubr.msk.f32.mxu1 %vm52_vm0, %v1299_v20 }
  0x4d   :  { %376 = vmatmul.mubr.f32.gmra.mrb[10].mxu0 %v1312_v24 }
  0x4e   :  { %495 = vmatmul.mubr.f32.gmra.mrb[10].mxu1 %v1312_v24 }
  0xa4   :  { %v519_v62 = vpop.permute.xlu1 %518 }
  0xb0   :  { %v509_v39 = vpop.permute.xlu0 %508 }
  0xb4   :  { %v514_v52 = vpop.permute.xlu0 %513 }
  0xf8   :  { %v678_v25 = vpop.f32.mrb[0].mxu0 }
  0xf9   :  { %v719_v49 = vpop.f32.mrb[0].mxu1  ;;  %v679_v15 = vpop.f32.mrb[1].mxu0 }
  0xfa   :  { %v680_v16 = vadd.f32 %v679_v15, %v678_v25  ;;  %v720_v18 = vpop.f32.mrb[1].mxu1 }
  0xfb   :  { %v721_v5 = vadd.f32 %v720_v18, %v719_v49 }
  0xfc   :  { %v681_v19 = vpop.f32.mrb[2].mxu0 }
  0xfd   :  { %v262_v21 = vmax.f32 %v680_v16, %v721_v5  ;;  %v722_v22 = vpop.f32.mrb[2].mxu1  ;;  %v682_v9 = vpop.f32.mrb[3].mxu0 }
  0xfe   :  { %v683_v23 = vadd.f32 %v682_v9, %v681_v19  ;;  %v723_v26 = vpop.f32.mrb[3].mxu1 }
  0xff   :  { %v724_v27 = vadd.f32 %v723_v26, %v722_v22 }
 0x100   :  { %v684_v28 = vpop.f32.mrb[4].mxu0 }
 0x101   :  { %v263_v29 = vmax.f32 %v683_v23, %v724_v27  ;;  %v725_v20 = vpop.f32.mrb[4].mxu1  ;;  %v685_v30 = vpop.f32.mrb[5].mxu0 }
 0x102   :  { %v686_v31 = vadd.f32 %v685_v30, %v684_v28  ;;  %v726_v32 = vpop.f32.mrb[5].mxu1 }
 0x103   :  { %v727_v24 = vadd.f32 %v726_v32, %v725_v20 }
 0x105   :  { %v264_v33 = vmax.f32 %v686_v31, %v727_v24 }
 0x118   :  { %v760_v34 = vpop.f32.mrb[6].mxu0 }
 0x119   :  { %v761_v35 = vpop.f32.mrb[7].mxu0  ;;  %v801_v36 = vpop.f32.mrb[6].mxu1 }
 0x11a   :  { %v762_v37 = vadd.f32 %v761_v35, %v760_v34  ;;  %v802_v38 = vpop.f32.mrb[7].mxu1 }
 0x11b   :  { %v803_v40 = vadd.f32 %v802_v38, %v801_v36 }
 0x11c   :  { %v381_v41 = vmax.f32 %v262_v21, %v762_v37  ;;  %v763_v42 = vpop.f32.mrb[8].mxu0 }
 0x11d   :  { %v764_v43 = vpop.f32.mrb[9].mxu0  ;;  %v804_v44 = vpop.f32.mrb[8].mxu1 }
 0x11e   :  { %v765_v45 = vadd.f32 %v764_v43, %v763_v42  ;;  %v805_v46 = vpop.f32.mrb[9].mxu1  ;;  %v500_v17 = vmax.f32 %v381_v41, %v803_v40 }
 0x11f   :  { %v806_v47 = vadd.f32 %v805_v46, %v804_v44 }
 0x120   :  { %v382_v48 = vmax.f32 %v263_v29, %v765_v45  ;;  %v521_v50 = vadd.f32 %v509_v39, %v500_v17  ;;  %v766_v51 = vpop.f32.mrb[10].mxu0 }
 0x121   :  { %v767_v53 = vpop.f32.mrb[11].mxu0  ;;  %v807_v54 = vpop.f32.mrb[10].mxu1 }
 0x122   :  { %v524_v55 = vmax.f32 %v521_v50, 0.0  ;;  %v768_v56 = vadd.f32 %v767_v53, %v766_v51  ;;  %v808_v57 = vpop.f32.mrb[11].mxu1  ;;  %v501_v58 = vmax.f32 %v382_v48, %v806_v47 }
 0x123   :  { %v809_v59 = vadd.f32 %v808_v57, %v807_v54 }
 0x124   :  { %527 = vst [vmem:[%s1451_s3] sm:$0xff] %v524_v55  ;;  %v383_v60 = vmax.f32 %v264_v33, %v768_v56  ;;  %v522_v61 = vadd.f32 %v514_v52, %v501_v58 }
 0x126   :  { %v525_v63 = vmax.f32 %v522_v61, 0.0  ;;  %v502_v0 = vmax.f32 %v383_v60, %v809_v59 }
 0x128   :  { %528 = vst [vmem:[%s1451_s3 + $0x8] sm:$0xff] %v525_v63  ;;  %v523_v1 = vadd.f32 %v519_v62, %v502_v0 }
 0x12a   :  { %v526_v2 = vmax.f32 %v523_v1, 0.0 }
 0x12c   :  { %529 = vst [vmem:[%s1451_s3 + $0x10] sm:$0xf] %v526_v2 }

// kernel: _lambda_.5
= control target key start
LH: loop header
LB: loop body
LE: loop exit
PB: predicated region body
PF: predicated region fallthrough
CT: control target
= control target key end

     0   :  { %s3043_s0 = inlined_call_operand.vmem [shape: f32[8,320], index: 0, kind: input, shape index: {}]   ;;  %s3044_s1 = inlined_call_operand.vmem [shape: f32[6,10], index: 1, kind: input, shape index: {}]   ;;  %s3045_s2 = inlined_call_operand.vmem [shape: f32[320,40], index: 2, kind: input, shape index: {}]   ;;  %s3046_s3 = inlined_call_operand.vmem [shape: f32[1,40], index: 3, kind: input, shape index: {}]   ;;  %s3047_s4 = inlined_call_operand.vmem [shape: f32[40,40], index: 4, kind: input, shape index: {}]   ;;  %s3048_s5 = inlined_call_operand.vmem [shape: f32[1,40], index: 5, kind: input, shape index: {}]   ;;  %s3049_s6 = inlined_call_operand.vmem [shape: f32[40,40], index: 6, kind: input, shape index: {}]   ;;  %s3050_s7 = inlined_call_operand.vmem [shape: f32[1,40], index: 7, kind: input, shape index: {}]   ;;  %s3051_s8 = inlined_call_operand.vmem [shape: f32[40,40], index: 8, kind: input, shape index: {}]   ;;  %s3052_s9 = inlined_call_operand.vmem [shape: f32[10,40], index: 9, kind: input, shape index: {}]   ;;  %s3053_s10 = inlined_call_operand.vmem [shape: f32[1,40], index: 10, kind: input, shape index: {}]   ;;  %s3054_s11 = inlined_call_operand.vmem [shape: f32[40,40], index: 11, kind: input, shape index: {}]   ;;  %s3055_s12 = inlined_call_operand.vmem [shape: f32[1,40], index: 12, kind: input, shape index: {}]   ;;  %s3056_s13 = inlined_call_operand.vmem [shape: f32[20,10], index: 13, kind: input, shape index: {}]   ;;  %s3057_s14 = inlined_call_operand.vmem [shape: f32[20,10], index: 14, kind: input, shape index: {}]   ;;  %s3058_s15 = inlined_call_operand.vmem [shape: f32[1,10], index: 15, kind: input, shape index: {}]   ;;  %s3059_s16 = inlined_call_operand.hbm [shape: f32[2,10], index: 16, kind: output, shape index: {}]  }
   0x1   :  { %3061 = sst [smem:[#allocation5_spill]] %s3043_s0 }
   0x2   :  { %v73_v0 = vld [vmem:[%s3045_s2 + $0x80] sm:$0xff]  ;;  %v74_v1 = vld [vmem:[%s3045_s2 + $0x88] sm:$0xff]  ;;  %v75_v5 = vld [vmem:[%s3045_s2 + $0x90] sm:$0xff]  ;;  %v2538_v7 = vmov 0.0|0.0   ;;  %vm2539_vm0 = vmmov 0   ;;  %v2540_v8 = vmov 0.0  }
   0x3   :  { %v57_v2 = vld [vmem:[%s3045_s2] sm:$0xff]  ;;  %v2380_v3 = vpack.c.bf16 %v74_v1, %v73_v0  ;;  %v58_v4 = vld [vmem:[%s3045_s2 + $0x8] sm:$0xff]  ;;  %v76_v6 = vld [vmem:[%s3045_s2 + $0x98] sm:$0xff]  ;;  %2412 = vmatprep.subr.bf16.mxu1 %v2538_v7  ;;  %2190 = vmatprep.mubr.msk.f32.mxu1 %vm2539_vm0, %v2540_v8  ;;  %s3062_s26 = sld [smem:[#allocation5_spill]] }
   0x4   :  { %v2382_v9 = vpack.c.bf16 %v58_v4, %v57_v2  ;;  %v2384_v10 = vpack.c.bf16 %v76_v6, %v75_v5  ;;  %v59_v11 = vld [vmem:[%s3045_s2 + $0x10] sm:$0xff]  ;;  %v60_v12 = vld [vmem:[%s3045_s2 + $0x18] sm:$0xff]  ;;  %v77_v13 = vld [vmem:[%s3045_s2 + $0xa0] sm:$0xff] }
   0x5   :  { %2381 = vmatprep.subr.bf16.mxu0 %v2380_v3  ;;  %v78_v14 = vld [vmem:[%s3045_s2 + $0xa8] sm:$0xff]  ;;  %v2386_v15 = vpack.c.bf16 %v60_v12, %v59_v11  ;;  %v61_v17 = vld [vmem:[%s3045_s2 + $0x20] sm:$0xff]  ;;  %v79_v19 = vld [vmem:[%s3045_s2 + $0xb0] sm:$0xff] }
   0x6   :  { %2383 = vmatpush3.bf16.msra.mxu0 %v2382_v9  ;;  %v2388_v16 = vpack.c.bf16 %v78_v14, %v77_v13  ;;  %v62_v18 = vld [vmem:[%s3045_s2 + $0x28] sm:$0xff]  ;;  %v80_v20 = vld [vmem:[%s3045_s2 + $0xb8] sm:$0xff]  ;;  %v89_v22 = vld [vmem:[%s3045_s2 + $0x100] sm:$0xff] }
   0x7   :  { %2385 = vmatprep.subr.bf16.mxu0 %v2384_v10  ;;  %v2390_v21 = vpack.c.bf16 %v62_v18, %v61_v17  ;;  %v90_v23 = vld [vmem:[%s3045_s2 + $0x108] sm:$0xff]  ;;  %v2392_v24 = vpack.c.bf16 %v80_v20, %v79_v19  ;;  %v63_v25 = vld [vmem:[%s3045_s2 + $0x30] sm:$0xff]  ;;  %v64_v26 = vld [vmem:[%s3045_s2 + $0x38] sm:$0xff] }
   0x8   :  { %v81_v27 = vld [vmem:[%s3045_s2 + $0xc0] sm:$0xff]  ;;  %v2413_v28 = vpack.c.bf16 %v90_v23, %v89_v22  ;;  %v82_v29 = vld [vmem:[%s3045_s2 + $0xc8] sm:$0xff]  ;;  %v91_v30 = vld [vmem:[%s3045_s2 + $0x110] sm:$0xff]  ;;  %v2394_v33 = vpack.c.bf16 %v64_v26, %v63_v25 }
   0x9   :  { %v92_v31 = vld [vmem:[%s3045_s2 + $0x118] sm:$0xff]  ;;  %v93_v34 = vld [vmem:[%s3045_s2 + $0x120] sm:$0xff]  ;;  %v94_v35 = vld [vmem:[%s3045_s2 + $0x128] sm:$0xff]  ;;  %v2396_v37 = vpack.c.bf16 %v82_v29, %v81_v27 }
   0xa   :  { %2387 = vmatpush3.bf16.msra.mxu0 %v2386_v15  ;;  %2414 = vmatpush3.bf16.msra.mxu1 %v2413_v28  ;;  %v2416_v32 = vpack.c.bf16 %v92_v31, %v91_v30  ;;  %v55_v36 = vld [vmem:[%s3062_s26 + $0x8] sm:$0xff]  ;;  %v65_v38 = vld [vmem:[%s3045_s2 + $0x40] sm:$0xff]  ;;  %v83_v40 = vld [vmem:[%s3045_s2 + $0xd0] sm:$0xff]  ;;  %v2419_v42 = vpack.c.bf16 %v94_v35, %v93_v34 }
   0xb   :  { %2389 = vmatprep.subr.bf16.mxu0 %v2388_v16  ;;  %2415 = vmatprep.subr.bf16.mxu1 %v2538_v7  ;;  %v66_v39 = vld [vmem:[%s3045_s2 + $0x48] sm:$0xff]  ;;  %v84_v41 = vld [vmem:[%s3045_s2 + $0xd8] sm:$0xff]  ;;  %v95_v44 = vld [vmem:[%s3045_s2 + $0x130] sm:$0xff] }
   0xc   :  { %172 = vmatprep.mubr.f32.mxu0 %v55_v36  ;;  %v2398_v43 = vpack.c.bf16 %v66_v39, %v65_v38  ;;  %v96_v45 = vld [vmem:[%s3045_s2 + $0x138] sm:$0xff] }
   0xe   :  { %2391 = vmatpush3.bf16.msra.mxu0 %v2390_v21  ;;  %2417 = vmatpush3.bf16.msra.mxu1 %v2416_v32 }
   0xf   :  { %2393 = vmatprep.subr.bf16.mxu0 %v2392_v24  ;;  %2418 = vmatprep.subr.bf16.mxu1 %v2538_v7 }
  0x12   :  { %2395 = vmatpush3.bf16.msra.mxu0 %v2394_v33 }
  0x13   :  { %21 = vsyncpa [#allocation3], 0  ;;  %2397 = vmatprep.subr.bf16.mxu0 %v2396_v37  ;;  %v2400_v46 = vpack.c.bf16 %v84_v41, %v83_v40  ;;  %v67_v47 = vld [vmem:[%s3045_s2 + $0x50] sm:$0xff]  ;;  %v68_v48 = vld [vmem:[%s3045_s2 + $0x58] sm:$0xff]  ;;  %2420 = vmatpush3.bf16.msra.mxu1 %v2419_v42  ;;  %v2422_v51 = vpack.c.bf16 %v96_v45, %v95_v44  ;;  %vm104_vm1 = vcmask 523264   ;;  %vm439_vm2 = vcmask 1041408  }
  0x14   :  { %v85_v49 = vld [vmem:[%s3045_s2 + $0xe0] sm:$0xff]  ;;  %v86_v50 = vld [vmem:[%s3045_s2 + $0xe8] sm:$0xff]  ;;  %v2402_v52 = vpack.c.bf16 %v68_v48, %v67_v47  ;;  %2421 = vmatprep.subr.bf16.mxu1 %v2538_v7  ;;  %v87_v56 = vld [vmem:[%s3045_s2 + $0xf0] sm:$0xff]  ;;  %vm2541_vm3 = vmmov 1   ;;  %vm435_vm5 = vcmask 80896   ;;  %vm261_vm6 = vcmask 326656  }
  0x15   :  { %v2404_v53 = vpack.c.bf16 %v86_v50, %v85_v49  ;;  %v69_v54 = vld [vmem:[%s3045_s2 + $0x60] sm:$0xff]  ;;  %v70_v55 = vld [vmem:[%s3045_s2 + $0x68] sm:$0xff]  ;;  %v88_v57 = vld [vmem:[%s3045_s2 + $0xf8] sm:$0xff]  ;;  %vm697_vm7 = vcmask 162816   ;;  %vm775_vm13 = vcmask 41984   ;;  %vm793_vm14 = vcmask 1045504  }
  0x16   :  { %2399 = vmatpush3.bf16.msra.mxu0 %v2398_v43  ;;  %v56_v58 = vld [vmem:[%s3062_s26 + $0x10] sm:$0xff]  ;;  %v2406_v59 = vpack.c.bf16 %v70_v55, %v69_v54  ;;  %v2408_v60 = vpack.c.bf16 %v88_v57, %v87_v56  ;;  %v72_v62 = vld [vmem:[%s3045_s2 + $0x78] sm:$0xff]  ;;  %v433_v0 = vld [vmem:[%s3052_s9] sm:$0xff]  ;;  %vm789_vm15 = vcmask 48128  }
  0x17   :  { %2401 = vmatprep.subr.bf16.mxu0 %v2400_v46  ;;  %2423 = vmatpush3.bf16.msra.mxu1 %v2422_v51  ;;  %v71_v61 = vld [vmem:[%s3045_s2 + $0x70] sm:$0xff]  ;;  %v434_v1 = vld [vmem:[%s3052_s9 + $0x8] sm:$0x3]  ;;  %v54_v2 = vld [vmem:[%s3062_s26] sm:$0xff] }
  0x18   :  { %2424 = vmatprep.subr.bf16.mxu1 %v2538_v7  ;;  %v2410_v63 = vpack.c.bf16 %v72_v62, %v71_v61  ;;  %v2437_v3 = vpack.c.bf16 %v434_v1, %v433_v0  ;;  %vm2438_vm4 = vmpackc.low %vm439_vm2, %vm2541_vm3  ;;  %v249_v4 = vld [vmem:[%s3047_s4] sm:$0xff]  ;;  %v250_v5 = vld [vmem:[%s3047_s4 + $0x8] sm:$0xff] }
  0x19   :  { %v2425_v6 = vpack.c.bf16 %v250_v5, %v249_v4  ;;  %v427_v9 = vld [vmem:[%s3051_s8] sm:$0xff]  ;;  %v428_v10 = vld [vmem:[%s3051_s8 + $0x8] sm:$0xff]  ;;  %v251_v13 = vld [vmem:[%s3047_s4 + $0x10] sm:$0xff] }
  0x1a   :  { %2403 = vmatpush3.bf16.msra.mxu0 %v2402_v52  ;;  %2191 = vmatmul.mubr.msk.f32.vlgmr.msra.gmra.mrb[0].mxu1 %vm104_vm1, %v56_v58  ;;  %v2441_v11 = vpack.c.bf16 %v428_v10, %v427_v9  ;;  %v432_v12 = vld [vmem:[%s3044_s1] sm:$0x3f]  ;;  %v252_v14 = vld [vmem:[%s3047_s4 + $0x18] sm:$0xff]  ;;  %v429_v16 = vld [vmem:[%s3051_s8 + $0x10] sm:$0xff]  ;;  %vm1034_vm1 = vcmask 1043456   ;;  %s2543_s1 = smov [#allocation2]  }
  0x1b   :  { %2405 = vmatprep.subr.bf16.mxu0 %v2404_v53  ;;  %2203 = vmatprep.mubr.msk.f32.mxu1 %vm2539_vm0, %v2540_v8  ;;  %v2428_v15 = vpack.c.bf16 %v252_v14, %v251_v13  ;;  %v430_v17 = vld [vmem:[%s3051_s8 + $0x18] sm:$0xff]  ;;  %v253_v19 = vld [vmem:[%s3047_s4 + $0x20] sm:$0xff]  ;;  %v337_v29 = vld [vmem:[%s3049_s6 + $0x8] sm:$0xff]  ;;  %v686_v13 = vlaneseq  ;;  %s2016_s2 = sshll.u32 %s2543_s1, 4  ;;  %s2017_s2 = int_to_ptr.vmem [resolvable:$true] %s2016_s2 }
  0x1c   :  { %2426 = vmatpush3.bf16.msra.mxu1 %v2425_v6  ;;  %v2444_v18 = vpack.c.bf16 %v430_v17, %v429_v16  ;;  %v431_v20 = vld [vmem:[%s3051_s8 + $0x20] sm:$0xff]  ;;  %v338_v33 = vld [vmem:[%s3049_s6 + $0x10] sm:$0xff]  ;;  %v339_v34 = vld [vmem:[%s3049_s6 + $0x18] sm:$0xff]  ;;  %p2519_p1 = scmp.lt.s32.totalorder %s2017_s2, %s2017_s2 }
  0x1d   :  { %2427 = vmatprep.subr.bf16.mxu1 %v2538_v7  ;;  %v2024_v25 = vld [vmem:[%s3046_s3] ss:$0 sm:$0xff]  ;;  %v2434_v36 = vpack.c.bf16 %v339_v34, %v338_v33  ;;  %v596_v42 = vld [vmem:[%s3054_s11 + $0x8] sm:$0xff]  ;;  %v597_v51 = vld [vmem:[%s3054_s11 + $0x10] sm:$0xff]  ;;  %v687_v14 = vshrl.u32 %v686_v13, 7 }
  0x1e   :  { %2407 = vmatpush3.bf16.msra.mxu0 %v2406_v59  ;;  %v336_v28 = vld [vmem:[%s3049_s6] sm:$0xff]  ;;  %v598_v52 = vld [vmem:[%s3054_s11 + $0x18] sm:$0xff] }
  0x1f   :  { %2409 = vmatprep.subr.bf16.mxu0 %v2408_v60  ;;  %v2431_v31 = vpack.c.bf16 %v337_v29, %v336_v28  ;;  %v340_v39 = vld [vmem:[%s3049_s6 + $0x20] sm:$0xff]  ;;  %v2450_v54 = vpack.c.bf16 %v598_v52, %v597_v51  ;;  %v691_v16 = vadd.s32 2, %v687_v14  ;;  %v694_v17 = vadd.s32 4, %v687_v14  ;;  %v1030_v51 = vld [vmem:[%s3057_s14 + $0x10] sm:$0xf] }
  0x20   :  { %2429 = vmatpush3.bf16.msra.mxu1 %v2428_v15  ;;  %v2026_v40 = vld [vmem:[%s3048_s5] ss:$0 sm:$0xff]  ;;  %v689_v15 = vand.u32 127, %v686_v13  ;;  %v1036_v52 = vsel %vm1034_vm1, %v1030_v51, 0 }
  0x21   :  { %2201 = vmatprep.subr.mxu1 %v2540_v8  ;;  %v595_v41 = vld [vmem:[%s3054_s11] sm:$0xff] }
  0x22   :  { %2411 = vmatpush3.bf16.msra.mxu0 %v2410_v63  ;;  %v2447_v47 = vpack.c.bf16 %v596_v42, %v595_v41  ;;  %v2034_v53 = vld [vmem:[%s3053_s10] ss:$0 sm:$0xff]  ;;  %vm690_vm8 = vcmp.eq.s32.totalorder %v689_v15, %v687_v14  ;;  %vm692_vm9 = vcmp.eq.s32.totalorder %v689_v15, %v691_v16  ;;  %vm695_vm11 = vcmp.eq.s32.totalorder %v689_v15, %v694_v17 }
  0x23   :  { %2436 = vmatprep.subr.bf16.mxu0 %v2538_v7  ;;  %v599_v56 = vld [vmem:[%s3054_s11 + $0x20] sm:$0xff]  ;;  %vm693_vm10 = vmor %vm690_vm8, %vm692_vm9 }
  0x24   :  { %2202 = vmatpush3.msra.mxu1 %v253_v19  ;;  %v2028_v58 = vld [vmem:[%s3050_s7] ss:$0 sm:$0xff]  ;;  %s2542_s7 = smov 108   ;;  %vm696_vm12 = vmor %vm693_vm10, %vm695_vm11 }
  0x25   :  { %173 = vmatmul.mubr.f32.vlgmr.msra.gmra.mrb[0].mxu0 %v54_v2  ;;  %2430 = vmatprep.subr.bf16.mxu1 %v2538_v7  ;;  %v2035_v63 = vld [vmem:[%s3055_s12] ss:$0 sm:$0xff] }
  0x26   :  { %2439 = vmatpush3.bf16.msk.msra.mxu0 %vm2438_vm4, %v2437_v3  ;;  %2223 = vmatprep.mubr.msk.f32.mxu0 %vm2539_vm0, %v2540_v8 }
  0x27   :  { %2440 = vmatprep.subr.bf16.mxu0 %v2538_v7 }
  0x29   :  { %2224 = vmatmul.mubr.msk.f32.vlgmr.msra.gmra.mrb[2].mxu0 %vm435_vm5, %v432_v12 }
  0x2a   :  { %2442 = vmatpush3.bf16.msra.mxu0 %v2441_v11  ;;  %2236 = vmatprep.mubr.msk.f32.mxu0 %vm2539_vm0, %v2540_v8 }
  0x2b   :  { %2443 = vmatprep.subr.bf16.mxu0 %v2538_v7 }
  0x2e   :  { %2445 = vmatpush3.bf16.msra.mxu0 %v2444_v18 }
  0x2f   :  { %2234 = vmatprep.subr.mxu0 %v2540_v8 }
  0x32   :  { %2235 = vmatpush3.msra.mxu0 %v431_v20 }
  0x33   :  { %2252 = vmatprep.subr.mxu0 %v2540_v8 }
  0xed   :  { %v244_v21 = vpop.f32.mrb[0].mxu1 }
  0xee   :  { %v2192_v22 = vpop.f32.mrb[1].mxu1 }
  0xf8   :  { %v2079_v23 = vpop.f32.mrb[0].mxu0 }
  0xf9   :  { %v2080_v24 = vpop.f32.mrb[1].mxu0 }
  0xfa   :  { %v2081_v26 = vadd.f32 %v2080_v24, %v2079_v23 }
  0xfc   :  { %v175_v27 = vadd.f32 %v2081_v26, %v2024_v25  ;;  %v509_v37 = vpop.f32.mrb[2].mxu0 }
  0xfd   :  { %v2225_v38 = vpop.f32.mrb[3].mxu0 }
  0xfe   :  { %v245_v30 = vadd.f32 %v244_v21, %v175_v27 }
 0x100   :  { %v248_v32 = vmax.f32 %v245_v30, 0.0 }
 0x102   :  { %v513_v35 = vrot.slane %v248_v32, 2  ;;  %2204 = vmatmul.mubr.msk.f32.vlgmr.msra.gmra.mrb[2].mxu1 %vm261_vm6, %v248_v32 }
 0x103   :  { %2432 = vmatpush3.bf16.msra.mxu1 %v2431_v31  ;;  %2216 = vmatprep.mubr.msk.f32.mxu1 %vm2539_vm0, %v2540_v8 }
 0x104   :  { %2237 = vmatmul.mubr.msk.f32.vlgmr.msra.gmra.mrb[4].mxu0 %vm261_vm6, %v513_v35  ;;  %2433 = vmatprep.subr.bf16.mxu1 %v2538_v7 }
 0x105   :  { %2254 = vmatprep.mubr.msk.f32.mxu0 %vm2539_vm0, %v2540_v8 }
 0x107   :  { %2435 = vmatpush3.bf16.msra.mxu1 %v2434_v36 }
 0x108   :  { %2214 = vmatprep.subr.mxu1 %v2540_v8 }
 0x10b   :  { %2215 = vmatpush3.msra.mxu1 %v340_v39 }
 0x10c   :  { %2446 = vmatprep.subr.bf16.mxu1 %v2538_v7 }
 0x1d5   :  { %v331_v43 = vpop.f32.mrb[2].mxu1 }
 0x1d6   :  { %v332_v44 = vadd.f32 %v2026_v40, %v331_v43  ;;  %v2205_v45 = vpop.f32.mrb[3].mxu1  ;;  %v1028_v43 = vld [vmem:[%s3057_s14] sm:$0xff] }
 0x1d7   :  { %v582_v46 = vpop.f32.mrb[4].mxu0  ;;  %v1039_v45 = vand.u32 4294901760, %v1028_v43 }
 0x1d8   :  { %v335_v48 = vmax.f32 %v332_v44, 0.0  ;;  %v583_v49 = vadd.f32 %v582_v46, %v509_v37  ;;  %v2238_v50 = vpop.f32.mrb[5].mxu0  ;;  %v1029_v44 = vld [vmem:[%s3057_s14 + $0x8] sm:$0xff] }
 0x1d9   :  { %v1042_v46 = vand.u32 4294901760, %v1029_v44 }
 0x1da   :  { %2217 = vmatmul.mubr.msk.f32.vlgmr.msra.gmra.mrb[4].mxu1 %vm261_vm6, %v335_v48  ;;  %v593_v55 = vadd.f32 %v2034_v53, %v583_v49 }
 0x1db   :  { %2448 = vmatpush3.bf16.msra.mxu1 %v2447_v47  ;;  %2249 = vmatprep.mubr.msk.f32.mxu1 %vm2539_vm0, %v2540_v8  ;;  %v2909_v47 = vsub.f32 %v1028_v43, %v1039_v45  ;;  %v2911_v48 = vsub.f32 %v1029_v44, %v1042_v46 }
 0x1dc   :  { %2449 = vmatprep.subr.bf16.mxu1 %v2538_v7  ;;  %v594_v57 = vmax.f32 %v593_v55, 0.0  ;;  %v2921_v55 = vand.u32 4294901760, %v1036_v52 }
 0x1dd   :  { %v1119_v49 = vand.u32 4294901760, %v2909_v47  ;;  %v1126_v50 = vand.u32 4294901760, %v2911_v48 }
 0x1df   :  { %2451 = vmatpush3.bf16.msra.mxu1 %v2450_v54  ;;  %v1120_v53 = vsub.f32 %v2909_v47, %v1119_v49  ;;  %v1127_v54 = vsub.f32 %v2911_v48, %v1126_v50 }
 0x1e0   :  { %2247 = vmatprep.subr.mxu1 %v2540_v8 }
 0x1e3   :  { %2248 = vmatpush3.msra.mxu1 %v599_v56  ;;  %v1121_v56 = vand.u32 4294901760, %v1120_v53 }
 0x1e4   :  { %2250 = vmatmul.mubr.msk.f32.vlgmr.msra.gmra.mrb[6].mxu1 %vm261_vm6, %v594_v57  ;;  %2257 = vmatprep.subr.mxu1 %v2540_v8  ;;  %v1128_v57 = vand.u32 4294901760, %v1127_v54 }
 0x1e5   :  { %2259 = vmatprep.mubr.msk.f32.mxu1 %vm2539_vm0, %v2540_v8 }
 0x2ad   :  { %v417_v59 = vpop.f32.mrb[4].mxu1 }
 0x2ae   :  { %v418_v60 = vadd.f32 %v2028_v58, %v417_v59  ;;  %v2218_v61 = vpop.f32.mrb[5].mxu1  ;;  %v2924_v58 = vsub.f32 %v1036_v52, %v2921_v55  ;;  %v2456_v59 = vpack.c.bf16 %v1128_v57, %v1121_v56 }
 0x2b0   :  { %v2030_v62 = vmul.f32 -1.442695, %v418_v60  ;;  %v1133_v60 = vand.u32 4294901760, %v2924_v58 }
 0x2b2   :  { %2494 = vpow2.f32 %v2030_v62  ;;  %v1134_v61 = vsub.f32 %v2924_v58, %v1133_v60 }
 0x2b4   :  { %v1135_v62 = vand.u32 4294901760, %v1134_v61 }
 0x2b7   :  { %v676_v0 = vpop.f32.mrb[6].mxu1 }
 0x2b8   :  { %v677_v1 = vadd.f32 %v2035_v63, %v676_v0  ;;  %v2251_v2 = vpop.f32.mrb[7].mxu1  ;;  %v2453_v63 = vpack.c.bf16 %v1042_v46, %v1039_v45  ;;  %v2459_v0 = vpack.c.bf16 %v2911_v48, %v2909_v47 }
 0x2b9   :  { %v1025_v2 = vld [vmem:[%s3056_s13] sm:$0xff] }
 0x2ba   :  { %v2037_v3 = vmul.f32 -1.442695, %v677_v1  ;;  %v2465_v1 = vpack.c.bf16 %v1126_v50, %v1119_v49 }
 0x2bc   :  { %v2495_v4 = vpop.eup %2494  ;;  %2496 = vpow2.f32 %v2037_v3  ;;  %v1026_v3 = vld [vmem:[%s3056_s13 + $0x8] sm:$0xff] }
 0x2bd   :  { %v424_v5 = vadd.f32 1.0, %v2495_v4 }
 0x2bf   :  { %2498 = vrcp.f32 %v424_v5 }
 0x2c6   :  { %v2497_v6 = vpop.eup %2496 }
 0x2c7   :  { %v683_v9 = vadd.f32 1.0, %v2497_v6  ;;  %v1517_v6 = vand.u32 4294901760, %v1025_v2 }
 0x2c9   :  { %v2499_v10 = vpop.eup %2498  ;;  %2500 = vrcp.f32 %v683_v9  ;;  %v1520_v9 = vand.u32 4294901760, %v1026_v3 }
 0x2ca   :  { %866 = vrot.lane.b32.xlu0 %v2499_v10, %s2542_s7 }
 0x2d3   :  { %v2501_v11 = vpop.eup %2500 }
 0x2d4   :  { %2253 = vmatpush3.xpose.msk.msra.mxu0 %vm697_vm7, %v2501_v11 }
 0x2d5   :  { %2262 = vmatprep.subr.mxu0 %v2540_v8 }
 0x2d7   :  { %2255 = vmatmul.mubr.msk.f32.vlgmr.msra.gmra.mrb[6].mxu0 %vm697_vm7, %v2499_v10  ;;  %v1027_v10 = vld [vmem:[%s3056_s13 + $0x10] sm:$0xf] }
 0x2d8   :  { %2263 = vmatpush3.xpose.msk.msra.mxu0 %vm697_vm7, %v2501_v11  ;;  %2264 = vmatprep.mubr.msk.f32.mxu0 %vm2539_vm0, %v2540_v8  ;;  %v1514_v13 = vsel %vm1034_vm1, %v1027_v10, 0 }
 0x2d9   :  { %2452 = vmatprep.subr.bf16.mxu0 %v2538_v7 }
 0x33c   :  { %v867_v12 = vpop.permute.xlu0 %866 }
 0x33d   :  { %2265 = vmatmul.mubr.msk.f32.vlgmr.msra.gmra.mrb[8].mxu0 %vm697_vm7, %v867_v12  ;;  %v2948_v12 = vsub.f32 %v1026_v3, %v1520_v9 }
 0x33e   :  { %2278 = vmatprep.mubr.msk.f32.mxu0 %vm2539_vm0, %v2540_v8  ;;  %2454 = vmatpush3.bf16.msra.mxu0 %v2453_v63 }
 0x33f   :  { %2276 = vmatprep.subr.mxu0 %v2540_v8 }
 0x342   :  { %2277 = vmatpush3.msra.mxu0 %v2921_v55 }
 0x343   :  { %2458 = vmatprep.subr.bf16.mxu0 %v2538_v7 }
 0x3aa   :  { %v770_v18 = vpop.f32.mrb[6].mxu0 }
 0x3ab   :  { %v774_v19 = vsel %vm696_vm12, %v770_v18, -1e+30  ;;  %v2256_v20 = vpop.f32.mrb[7].mxu0  ;;  %v1604_v18 = vand.u32 4294901760, %v2948_v12 }
 0x3ac   :  { %v776_v21 = vsel %vm775_vm13, %v774_v19, -inf }
 0x3ad   :  { %777 = vmax.xlane.f32.xlu0 %v776_v21 }
 0x410   :  { %v936_v22 = vpop.f32.mrb[8].mxu0 }
 0x411   :  { %v940_v23 = vsel %vm696_vm12, %v936_v22, -1e+30  ;;  %v2266_v24 = vpop.f32.mrb[9].mxu0 }
 0x412   :  { %v941_v25 = vsel %vm775_vm13, %v940_v23, -inf }
 0x413   :  { %942 = vmax.xlane.f32.xlu1 %v941_v25 }
 0x43a   :  { %v778_v26 = vpop.xlane.xlu0 %777 }
 0x43b   :  { %v779_v27 = vsub.f32 %v774_v19, %v778_v26  ;;  %v2954_v19 = vand.u32 4294901760, %v1514_v13 }
 0x43d   :  { %v780_v28 = vmul.f32 1.442695, %v779_v27  ;;  %v2965_v24 = vsub.f32 %v1514_v13, %v2954_v19  ;;  %v2046_v13 = vld [vmem:[%s3058_s15] ss:$0 sm:$0xff]  ;;  %s2514_s15 = scalar_lea.vmem %s2017_s2, 32 }
 0x43e   :  { %p2515_p0 = scmp.ne.s32.totalorder %s2017_s2, %s2514_s15  ;;  %p2520_p2 = scmp.lt.s32.totalorder %s2514_s15, %s2514_s15 }
 0x43f   :  { %2502 = vpow2.f32 %v780_v28 }
 0x440   :  { %p2521_p3 = por %p2520_p2, %p2519_p1 }
 0x442   :  { %p2522_p4 = pnand %p2521_p3, %p2515_p0 }
 0x449   :  { %v2503_v29 = vpop.eup %2502 }
 0x44a   :  { %v782_v30 = vsel %vm775_vm13, %v2503_v29, 0.0 }
 0x44b   :  { %783 = vadd.xlane.f32.xlu1 %v782_v30  ;;  %v1611_v30 = vand.u32 4294901760, %v2965_v24 }
 0x4a0   :  { %v943_v31 = vpop.xlane.xlu1 %942 }
 0x4a1   :  { %v944_v32 = vsub.f32 %v940_v23, %v943_v31  ;;  %v1605_v23 = vsub.f32 %v2948_v12, %v1604_v18 }
 0x4a3   :  { %v945_v33 = vmul.f32 1.442695, %v944_v32 }
 0x4a5   :  { %2504 = vpow2.f32 %v945_v33 }
 0x4af   :  { %v2505_v34 = vpop.eup %2504 }
 0x4b0   :  { %v947_v35 = vsel %vm775_vm13, %v2505_v34, 0.0 }
 0x4b1   :  { %948 = vadd.xlane.f32.xlu1 %v947_v35 }
 0x4c2   :  { %787 = vrot.lane.b32.xlu1 %v2501_v11, %s2542_s7  ;;  %v2946_v11 = vsub.f32 %v1025_v2, %v1517_v6 }
 0x4c4   :  { %v1597_v17 = vand.u32 4294901760, %v2946_v11 }
 0x4c6   :  { %v1598_v22 = vsub.f32 %v2946_v11, %v1597_v17 }
 0x4c8   :  { %v1599_v28 = vand.u32 4294901760, %v1598_v22 }
 0x4d8   :  { %v784_v36 = vpop.xlane.xlu1 %783 }
 0x4d9   :  { %2506 = vrcp.f32 %v784_v36 }
 0x4e3   :  { %v2507_v38 = vpop.eup %2506 }
 0x4e4   :  { %v786_v39 = vmul.f32 %v2507_v38, %v2503_v29  ;;  %v1606_v29 = vand.u32 4294901760, %v1605_v23 }
 0x4e6   :  { %v2474_v33 = vpack.c.bf16 %v1606_v29, %v1599_v28 }
 0x53e   :  { %v949_v37 = vpop.xlane.xlu1 %948 }
 0x53f   :  { %2508 = vrcp.f32 %v949_v37  ;;  %v2471_v37 = vpack.c.bf16 %v1520_v9, %v1517_v6 }
 0x542   :  { %v788_v40 = vpop.permute.xlu1 %787 }
 0x543   :  { %2258 = vmatpush3.msk.msra.mxu1 %vm793_vm14, %v788_v40 }
 0x544   :  { %2260 = vmatmul.mubr.msk.f32.vlgmr.msra.gmra.mrb[8].mxu1 %vm789_vm15, %v786_v39  ;;  %2267 = vmatprep.subr.mxu1 %v2540_v8 }
 0x545   :  { %2268 = vmatpush3.msk.msra.mxu1 %vm793_vm14, %v788_v40  ;;  %2269 = vmatprep.mubr.msk.f32.mxu1 %vm2539_vm0, %v2540_v8  ;;  %v2477_v40 = vpack.c.bf16 %v2948_v12, %v2946_v11 }
 0x546   :  { %2455 = vmatprep.subr.bf16.mxu1 %v2538_v7 }
 0x549   :  { %v2509_v41 = vpop.eup %2508 }
 0x54a   :  { %v951_v42 = vmul.f32 %v2509_v41, %v2505_v34  ;;  %v1612_v34 = vsub.f32 %v2965_v24, %v1611_v30 }
 0x54c   :  { %2270 = vmatmul.mubr.msk.f32.vlgmr.msra.gmra.mrb[10].mxu1 %vm789_vm15, %v951_v42  ;;  %v1613_v36 = vand.u32 4294901760, %v1612_v34  ;;  %v2483_v42 = vpack.c.bf16 %v1604_v18, %v1597_v17 }
 0x54d   :  { %2287 = vmatprep.mubr.msk.f32.mxu1 %vm2539_vm0, %v2540_v8  ;;  %2457 = vmatpush3.bf16.msra.mxu1 %v2456_v59 }
 0x54e   :  { %2285 = vmatprep.subr.mxu1 %v2540_v8 }
 0x551   :  { %2286 = vmatpush3.msra.mxu1 %v1135_v62 }
 0x552   :  { %2461 = vmatprep.subr.bf16.mxu1 %v2538_v7 }
 0x617   :  { %v862_v4 = vpop.f32.mrb[8].mxu1 }
 0x618   :  { %v2261_v5 = vpop.f32.mrb[9].mxu1  ;;  %v1511_v27 = vsel %vm697_vm7, %v862_v4, 0 }
 0x619   :  { %v1584_v32 = vand.u32 4294901760, %v1511_v27 }
 0x61b   :  { %v1585_v35 = vsub.f32 %v1511_v27, %v1584_v32 }
 0x61d   :  { %v1586_v38 = vand.u32 4294901760, %v1585_v35 }
 0x61f   :  { %v1021_v14 = vpop.f32.mrb[10].mxu1  ;;  %v1587_v39 = vsub.f32 %v1585_v35, %v1586_v38 }
 0x620   :  { %v1032_v15 = vsel %vm697_vm7, %v1021_v14, 0  ;;  %v2271_v16 = vpop.f32.mrb[11].mxu1 }
 0x621   :  { %v1106_v20 = vand.u32 4294901760, %v1032_v15  ;;  %v1588_v41 = vand.u32 4294901760, %v1587_v39 }
 0x623   :  { %v1107_v21 = vsub.f32 %v1032_v15, %v1106_v20  ;;  %2288 = vmatmul.mubr.f32.vlgmr.msra.gmra.mrb[12].mxu1 %v1106_v20 }
 0x624   :  { %2463 = vmatpush3.bf16.msra.mxu1 %v2453_v63  ;;  %2305 = vmatprep.mubr.msk.f32.mxu1 %vm2539_vm0, %v2540_v8 }
 0x625   :  { %v1108_v25 = vand.u32 4294901760, %v1107_v21  ;;  %2303 = vmatprep.subr.mxu1 %v2540_v8 }
 0x627   :  { %v1109_v26 = vsub.f32 %v1107_v21, %v1108_v25 }
 0x628   :  { %2304 = vmatpush3.msra.mxu1 %v2921_v55 }
 0x629   :  { %v1110_v31 = vand.u32 4294901760, %v1109_v26  ;;  %2306 = vmatmul.mubr.f32.vlgmr.msra.gmra.mrb[14].mxu1 %v1108_v25  ;;  %2467 = vmatprep.subr.bf16.mxu1 %v2538_v7 }
 0x62a   :  { %2469 = vmatpush3.bf16.msra.mxu1 %v2453_v63  ;;  %2323 = vmatprep.mubr.msk.f32.mxu1 %vm2539_vm0, %v2540_v8 }
 0x62b   :  { %2279 = vmatmul.mubr.f32.vlgmr.msra.gmra.mrb[10].mxu0 %v1110_v31  ;;  %2321 = vmatprep.subr.mxu1 %v2540_v8 }
 0x62c   :  { %2460 = vmatpush3.bf16.msra.mxu0 %v2459_v0  ;;  %2296 = vmatprep.mubr.msk.f32.mxu0 %vm2539_vm0, %v2540_v8 }
 0x62d   :  { %2294 = vmatprep.subr.mxu0 %v2540_v8 }
 0x62e   :  { %2322 = vmatpush3.msra.mxu1 %v2921_v55 }
 0x62f   :  { %2324 = vmatmul.mubr.f32.vlgmr.msra.gmra.mrb[16].mxu1 %v1106_v20  ;;  %2473 = vmatprep.subr.bf16.mxu1 %v2538_v7 }
 0x630   :  { %2295 = vmatpush3.msra.mxu0 %v2924_v58  ;;  %2475 = vmatpush3.bf16.msra.mxu1 %v2474_v33 }
 0x631   :  { %2297 = vmatmul.mubr.f32.vlgmr.msra.gmra.mrb[12].mxu0 %v1107_v21  ;;  %2464 = vmatprep.subr.bf16.mxu0 %v2538_v7 }
 0x632   :  { %2466 = vmatpush3.bf16.msra.mxu0 %v2465_v1  ;;  %2339 = vmatprep.subr.mxu1 %v2540_v8 }
 0x633   :  { %2341 = vmatprep.mubr.msk.f32.mxu1 %vm2539_vm0, %v2540_v8  ;;  %2312 = vmatprep.subr.mxu0 %v2540_v8 }
 0x634   :  { %2340 = vmatpush3.msra.mxu1 %v1613_v36  ;;  %2314 = vmatprep.mubr.msk.f32.mxu0 %vm2539_vm0, %v2540_v8 }
 0x635   :  { %2342 = vmatmul.mubr.f32.vlgmr.msra.gmra.mrb[18].mxu1 %v1584_v32  ;;  %2479 = vmatprep.subr.bf16.mxu1 %v2538_v7 }
 0x636   :  { %2313 = vmatpush3.msra.mxu0 %v1133_v60  ;;  %2481 = vmatpush3.bf16.msra.mxu1 %v2471_v37 }
 0x637   :  { %2315 = vmatmul.mubr.f32.vlgmr.msra.gmra.mrb[14].mxu0 %v1106_v20  ;;  %2470 = vmatprep.subr.bf16.mxu0 %v2538_v7 }
 0x638   :  { %2472 = vmatpush3.bf16.msra.mxu0 %v2471_v37  ;;  %2357 = vmatprep.subr.mxu1 %v2540_v8 }
 0x639   :  { %2359 = vmatprep.mubr.msk.f32.mxu1 %vm2539_vm0, %v2540_v8  ;;  %2330 = vmatprep.subr.mxu0 %v2540_v8 }
 0x63a   :  { %2358 = vmatpush3.msra.mxu1 %v2954_v19  ;;  %2332 = vmatprep.mubr.msk.f32.mxu0 %vm2539_vm0, %v2540_v8 }
 0x63b   :  { %2360 = vmatmul.mubr.f32.vlgmr.msra.gmra.mrb[20].mxu1 %v1586_v38  ;;  %2485 = vmatprep.subr.bf16.mxu1 %v2538_v7 }
 0x63c   :  { %2331 = vmatpush3.msra.mxu0 %v2954_v19  ;;  %2487 = vmatpush3.bf16.msra.mxu1 %v2471_v37 }
 0x63d   :  { %2333 = vmatmul.mubr.f32.vlgmr.msra.gmra.mrb[16].mxu0 %v1588_v41  ;;  %2476 = vmatprep.subr.bf16.mxu0 %v2538_v7 }
 0x63e   :  { %2478 = vmatpush3.bf16.msra.mxu0 %v2477_v40  ;;  %2375 = vmatprep.subr.mxu1 %v2540_v8 }
 0x63f   :  { %2377 = vmatprep.mubr.msk.f32.mxu1 %vm2539_vm0, %v2540_v8  ;;  %2348 = vmatprep.subr.mxu0 %v2540_v8 }
 0x640   :  { %2376 = vmatpush3.msra.mxu1 %v2954_v19  ;;  %2350 = vmatprep.mubr.msk.f32.mxu0 %vm2539_vm0, %v2540_v8 }
 0x641   :  { %2378 = vmatmul.mubr.f32.vlgmr.msra.gmra.mrb[22].mxu1 %v1584_v32 }
 0x642   :  { %2349 = vmatpush3.msra.mxu0 %v2965_v24 }
 0x643   :  { %2351 = vmatmul.mubr.f32.vlgmr.msra.gmra.mrb[18].mxu0 %v1585_v35  ;;  %2482 = vmatprep.subr.bf16.mxu0 %v2538_v7 }
 0x644   :  { %2484 = vmatpush3.bf16.msra.mxu0 %v2483_v42  ;;  %2368 = vmatprep.mubr.msk.f32.mxu0 %vm2539_vm0, %v2540_v8  ;;  %vm1996_vm0 = vcmask 74752  }
 0x645   :  { %2366 = vmatprep.subr.mxu0 %v2540_v8 }
 0x648   :  { %2367 = vmatpush3.msra.mxu0 %v1611_v30 }
 0x649   :  { %2369 = vmatmul.mubr.f32.vlgmr.msra.gmra.mrb[20].mxu0 %v1584_v32 }
 0x6f6   :  { %v1198_v43 = vpop.f32.mrb[12].mxu1 }
 0x6f7   :  { %v2289_v44 = vpop.f32.mrb[13].mxu1 }
 0x6fc   :  { %v1352_v45 = vpop.f32.mrb[14].mxu1 }
 0x6fd   :  { %v2307_v46 = vpop.f32.mrb[15].mxu1 }
 0x6fe   :  { %v1112_v47 = vpop.f32.mrb[10].mxu0 }
 0x6ff   :  { %v1199_v48 = vadd.f32 %v1198_v43, %v1112_v47  ;;  %v2280_v49 = vpop.f32.mrb[11].mxu0 }
 0x702   :  { %v1506_v50 = vpop.f32.mrb[16].mxu1 }
 0x703   :  { %v2325_v51 = vpop.f32.mrb[17].mxu1 }
 0x704   :  { %v1276_v7 = vpop.f32.mrb[12].mxu0 }
 0x705   :  { %v1277_v52 = vadd.f32 %v1276_v7, %v1199_v48  ;;  %v2298_v53 = vpop.f32.mrb[13].mxu0 }
 0x707   :  { %v1353_v54 = vadd.f32 %v1352_v45, %v1277_v52 }
 0x708   :  { %v1676_v55 = vpop.f32.mrb[18].mxu1 }
 0x709   :  { %v2343_v56 = vpop.f32.mrb[19].mxu1 }
 0x70a   :  { %v1432_v8 = vpop.f32.mrb[14].mxu0 }
 0x70b   :  { %v1433_v57 = vadd.f32 %v1432_v8, %v1353_v54  ;;  %v2316_v58 = vpop.f32.mrb[15].mxu0 }
 0x70d   :  { %v1507_v59 = vadd.f32 %v1506_v50, %v1433_v57 }
 0x70e   :  { %v1830_v60 = vpop.f32.mrb[20].mxu1 }
 0x70f   :  { %v2361_v61 = vpop.f32.mrb[21].mxu1 }
 0x710   :  { %v1590_v62 = vpop.f32.mrb[16].mxu0 }
 0x711   :  { %v1591_v63 = vadd.f32 %v1590_v62, %v1507_v59  ;;  %v2334_v0 = vpop.f32.mrb[17].mxu0 }
 0x713   :  { %v1677_v1 = vadd.f32 %v1676_v55, %v1591_v63 }
 0x714   :  { %v1984_v2 = vpop.f32.mrb[22].mxu1 }
 0x715   :  { %v2379_v3 = vpop.f32.mrb[23].mxu1 }
 0x716   :  { %v1754_v4 = vpop.f32.mrb[18].mxu0 }
 0x717   :  { %v1755_v5 = vadd.f32 %v1754_v4, %v1677_v1  ;;  %v2352_v6 = vpop.f32.mrb[19].mxu0 }
 0x719   :  { %v1831_v9 = vadd.f32 %v1830_v60, %v1755_v5 }
 0x71c   :  { %v1910_v10 = vpop.f32.mrb[20].mxu0 }
 0x71d   :  { %v1911_v11 = vadd.f32 %v1910_v10, %v1831_v9  ;;  %v2370_v12 = vpop.f32.mrb[21].mxu0 }
 0x71f   :  { %v1985_v14 = vadd.f32 %v1984_v2, %v1911_v11 }
 0x721   :  { %v1995_v15 = vadd.f32 %v2046_v13, %v1985_v14 }
 0x723   :  { %v1997_v16 = vsel %vm1996_vm0, %v1995_v15, -inf }
 0x724   :  { %1998 = vmax.xlane.f32.xlu1 %v1997_v16 }
 0x7b1   :  { %v1999_v17 = vpop.xlane.xlu1 %1998 }
 0x7b2   :  { %v2000_v18 = vsub.f32 %v1995_v15, %v1999_v17 }
 0x7b4   :  { %v2001_v19 = vmul.f32 1.442695, %v2000_v18 }
 0x7b6   :  { %2510 = vpow2.f32 %v2001_v19 }
 0x7c0   :  { %v2511_v20 = vpop.eup %2510 }
 0x7c1   :  { %v2003_v21 = vsel %vm1996_vm0, %v2511_v20, 0.0 }
 0x7c2   :  { %2004 = vadd.xlane.f32.xlu0 %v2003_v21 }
 0x84f   :  { %v2005_v22 = vpop.xlane.xlu0 %2004 }
 0x850   :  { %2512 = vlog2.f32 %v2005_v22 }
 0x85a   :  { %v2513_v23 = vpop.eup %2512 }
 0x85b   :  { %v2007_v24 = vmul.f32 0.6931472, %v2513_v23 }
 0x85d   :  { %v2008_v25 = vsub.f32 %v2000_v18, %v2007_v24 }
 0x85f   :  { %2009 = vst.msk [vmem:[#allocation2] sm:$0x3] %vm1996_vm0, %v2008_v25 }
 0x860   :  { %2525 = shalt.err (!%p2522_p4)
}
 0x861   :  { %s2526_s5 = scalar_lea.hbm %s3059_s16, 32 }
 0x862   :  { %p2527_p5 = scmp.ne.s32.totalorder %s3059_s16, %s2526_s5  ;;  %p2530_p6 = scmp.lt.u32.totalorder %s2526_s5, %s3059_s16 }
 0x864   :  { %p2532_p7 = pnand %p2530_p6, %p2527_p5 }
 0x866   :  { %2535 = shalt.err (!%p2532_p7)
}
 0x867   :  { %2019 = dma.vmem_to_hbm [thread:$0]  %s2017_s2, 32, %s3059_s16, [#allocation3]  }
 0x868   :  { %2536 = dma.done.wait [#allocation3], 32  }
 0x869   :  { %2537 = vsyncadd [#allocation3], 4294967264 }
 0x86a   :  { %2023 = vsyncpa [#allocation3], 1 }

</bundles_post_ra>
